<compile_context>
chip_gen: v7x
topology: tpu7x:2x2x1
jax: 0.10.0
libtpu: 0.0.40
codegen_flags: <defaults>
</compile_context>

<pallas_src>
import jax
import jax.numpy as jnp
from jax.experimental import pallas as pl
from jax.experimental.pallas import tpu as pltpu


# ----------------------------------------------------------------------------
# Fused kernel factory: wavefronted L-layer LSTM recurrence + FC head, all in
# one kernel body, everything VMEM-resident.
# ----------------------------------------------------------------------------
def _make_fused_lstm_kernel(num_layers, T, Bp, H):
    H3 = 3 * H

    def kernel(*refs):
        # refs layout:
        #   [0]             x_ref      (T*Bp, D)   time-major rows, batch padded to Bp
        #   [1 : 1+3L]      per layer: w_ih_t (D_l,4H), w_hh_t (H,4H), b (1,4H)
        #                   (gate columns already permuted to [i, f, o, g])
        #   [1+3L]          w_fc_t     (H, O)
        #   [2+3L]          b_fc       (1, O)
        #   [3+3L]          out_ref    (T*Bp, O)
        L = num_layers
        x_ref = refs[0]
        layer_refs = refs[1:1 + 3 * L]
        w_fc_ref = refs[1 + 3 * L]
        b_fc_ref = refs[2 + 3 * L]
        out_ref = refs[3 + 3 * L]

        # Loop-invariant weights, loaded once.
        w_ih = [layer_refs[3 * l][...] for l in range(L)]       # (D_l, 4H)
        w_hh = [layer_refs[3 * l + 1][...] for l in range(L)]   # (H, 4H)
        bias = [layer_refs[3 * l + 2][...] for l in range(L)]   # (1, 4H)

        # Layer 0: input projection hoisted over ALL time steps (one MXU op,
        # bias folded in).  Layers >= 1 project per step so layer l's step t
        # depends only on layer l-1's step t (enables the wavefront).
        gx0 = (jnp.dot(x_ref[...], w_ih[0],
                       preferred_element_type=jnp.float32)
               + bias[0])                                       # (T*Bp, 4H)

        def cell(gates, c_prev):
            # Gate layout [i | f | o | g]: one sigmoid launch over 3H lanes,
            # one tanh over the last H lanes.
            sig = jax.nn.sigmoid(gates[:, :H3])
            i_g = sig[:, 0:H]
            f_g = sig[:, H:2 * H]
            o_g = sig[:, 2 * H:H3]
            g_g = jnp.tanh(gates[:, H3:])
            c_new = f_g * c_prev + i_g * g_g
            h_new = o_g * jnp.tanh(c_new)
            return h_new, c_new

        zeros = jnp.zeros((Bp, H), jnp.float32)
        h = [zeros] * L          # most recent hidden state per layer
        c = [zeros] * L
        h_top = [None] * T       # top layer's hidden sequence (feeds FC head)

        # Wavefront: macro-step s runs layer l's time step t = s - l.  All
        # cells inside one macro-step are mutually independent (updates are
        # committed only after the layer loop), so their MXU/EUP/VPU chains
        # interleave instead of serializing L*T deep.
        for s in range(T + L - 1):
            updates = {}
            for l in range(L):
                t = s - l
                if t < 0 or t >= T:
                    continue
                if l == 0:
                    # Static, sublane-tile-aligned slice of the hoisted proj.
                    gates = gx0[t * Bp:(t + 1) * Bp, :] + jnp.dot(
                        h[0], w_hh[0], preferred_element_type=jnp.float32)
                else:
                    # h[l-1] is still the value from macro-step s-1, i.e.
                    # layer l-1's output at time t.
                    gates = (jnp.dot(h[l - 1], w_ih[l],
                                     preferred_element_type=jnp.float32)
                             + jnp.dot(h[l], w_hh[l],
                                       preferred_element_type=jnp.float32)
                             + bias[l])
                h_new, c_new = cell(gates, c[l])
                updates[l] = (h_new, c_new)
                if l == L - 1:
                    h_top[t] = h_new
            for l, (hn, cn) in updates.items():
                h[l] = hn
                c[l] = cn

        # Fused FC head epilogue: one matmul + bias, single slab store.
        h_seq = jnp.concatenate(h_top, axis=0)                  # (T*Bp, H)
        out_ref[...] = (jnp.dot(h_seq, w_fc_ref[...],
                                preferred_element_type=jnp.float32)
                        + b_fc_ref[...]).astype(out_ref.dtype)

    return kernel


# ----------------------------------------------------------------------------
# Parameters (PyTorch layout) + one-time kernel-ready preparation
# ----------------------------------------------------------------------------
def init_params(key, input_size, hidden_size, output_size, num_layers):
    params = {"lstm": [], "fc": {}}
    k_lstm = 1.0 / jnp.sqrt(hidden_size)
    for layer in range(num_layers):
        in_sz = input_size if layer == 0 else hidden_size
        key, k1, k2, k3, k4 = jax.random.split(key, 5)
        w_ih = jax.random.uniform(k1, (4 * hidden_size, in_sz),
                                  minval=-k_lstm, maxval=k_lstm, dtype=jnp.float32)
        w_hh = jax.random.uniform(k2, (4 * hidden_size, hidden_size),
                                  minval=-k_lstm, maxval=k_lstm, dtype=jnp.float32)
        b_ih = jax.random.uniform(k3, (4 * hidden_size,),
                                  minval=-k_lstm, maxval=k_lstm, dtype=jnp.float32)
        b_hh = jax.random.uniform(k4, (4 * hidden_size,),
                                  minval=-k_lstm, maxval=k_lstm, dtype=jnp.float32)
        params["lstm"].append({"w_ih": w_ih, "w_hh": w_hh,
                               "b_ih": b_ih, "b_hh": b_hh})
    key, k1, k2 = jax.random.split(key, 3)
    k_fc = 1.0 / jnp.sqrt(hidden_size)
    params["fc"]["w"] = jax.random.uniform(k1, (output_size, hidden_size),
                                           minval=-k_fc, maxval=k_fc,
                                           dtype=jnp.float32)
    params["fc"]["b"] = jax.random.uniform(k2, (output_size,),
                                           minval=-k_fc, maxval=k_fc,
                                           dtype=jnp.float32)
    return params


def _reorder_gate_cols(a):
    """Permute gate columns [i|f|g|o] (PyTorch) -> [i|f|o|g] along last axis."""
    H = a.shape[-1] // 4
    return jnp.concatenate(
        [a[..., :2 * H], a[..., 3 * H:4 * H], a[..., 2 * H:3 * H]], axis=-1)


def prepare_params(params):
    """One-time prep: transpose, fold b_ih+b_hh, permute gates to [i,f,o,g]."""
    prepped = []
    for p in params["lstm"]:
        prepped.append(_reorder_gate_cols(p["w_ih"].T.astype(jnp.float32)))       # (D_l,4H)
        prepped.append(_reorder_gate_cols(p["w_hh"].T.astype(jnp.float32)))       # (H, 4H)
        prepped.append(_reorder_gate_cols(
            (p["b_ih"] + p["b_hh"])[None, :].astype(jnp.float32)))                # (1, 4H)
    prepped.append(params["fc"]["w"].T.astype(jnp.float32))                        # (H, O)
    prepped.append(params["fc"]["b"][None, :].astype(jnp.float32))                 # (1, O)
    return tuple(prepped)


# ----------------------------------------------------------------------------
# Forward
# ----------------------------------------------------------------------------
@jax.jit
def lstm_model_forward(prepped, x):
    """x: (B, T, input_size) batch-first, like PyTorch. Returns (B, T, output_size)."""
    B, T, D = x.shape
    L = (len(prepped) - 2) // 3
    H = prepped[1].shape[0]          # w_hh_t is (H, 4H)
    O = prepped[-2].shape[1]         # w_fc_t is (H, O)

    # Pad batch to a full sublane tile (multiple of 8): per-step slices inside
    # the kernel become tile-aligned; cost is unchanged (a (2,·) row block
    # already occupied a padded vreg).  Padding is sliced off afterwards.
    Bp = ((B + 7) // 8) * 8
    x_p = x.astype(jnp.float32)
    if Bp != B:
        x_p = jnp.pad(x_p, ((0, Bp - B), (0, 0), (0, 0)))

    # Layout plumbing (tiny): time-major (T*Bp, D) rows for the kernel.
    x_tm = jnp.transpose(x_p, (1, 0, 2)).reshape(T * Bp, D)

    kernel = _make_fused_lstm_kernel(L, T, Bp, H)
    y = pl.pallas_call(
        kernel,
        out_shape=jax.ShapeDtypeStruct((T * Bp, O), jnp.float32),
        in_specs=[pl.BlockSpec(memory_space=pltpu.MemorySpace.VMEM)]
                 * (1 + len(prepped)),
        out_specs=pl.BlockSpec(memory_space=pltpu.MemorySpace.VMEM),
    )(x_tm, *prepped)

    y = jnp.transpose(y.reshape(T, Bp, O), (1, 0, 2))           # (Bp, T, O)
    return y[:B]                                                # drop batch padding


# ----------------------------------------------------------------------------
# Pure-JAX reference (lax.scan, original PyTorch gate order) for correctness
# ----------------------------------------------------------------------------
def reference_forward(params, x):
    B, T, _ = x.shape
    h_seq = jnp.transpose(x, (1, 0, 2)).astype(jnp.float32)     # (T, B, D)
    for layer_p in params["lstm"]:
        H = layer_p["w_hh"].shape[1]
        w_ih, w_hh = layer_p["w_ih"], layer_p["w_hh"]
        b = layer_p["b_ih"] + layer_p["b_hh"]

        def step(carry, x_t):
            h, c = carry
            gates = x_t @ w_ih.T + h @ w_hh.T + b
            i = jax.nn.sigmoid(gates[:, 0 * H:1 * H])
            f = jax.nn.sigmoid(gates[:, 1 * H:2 * H])
            g = jnp.tanh(gates[:, 2 * H:3 * H])
            o = jax.nn.sigmoid(gates[:, 3 * H:4 * H])
            c = f * c + i * g
            h = o * jnp.tanh(c)
            return (h, c), h

        init = (jnp.zeros((B, H), jnp.float32), jnp.zeros((B, H), jnp.float32))
        _, h_seq = jax.lax.scan(step, init, h_seq)
    out = jnp.transpose(h_seq, (1, 0, 2))
    return out @ params["fc"]["w"].T + params["fc"]["b"]


if __name__ == "__main__":
    # x: (batch=2, sequence_length=8, input_size=4), hidden=32, 2 layers, out=1
    input_size, sequence_length, hidden_size, output_size, num_layers = 4, 8, 32, 1, 2

    key = jax.random.PRNGKey(0)
    key, pkey, xkey = jax.random.split(key, 3)
    params = init_params(pkey, input_size, hidden_size, output_size, num_layers)
    prepped = prepare_params(params)
    x = jax.random.normal(xkey, (2, sequence_length, input_size), dtype=jnp.float32)

    y = lstm_model_forward(prepped, x)
    jax.block_until_ready(y)

    y_ref = reference_forward(params, x)
    assert y.shape == (2, sequence_length, output_size), y.shape
    assert jnp.allclose(y, y_ref, atol=1e-5, rtol=1e-5), (
        float(jnp.max(jnp.abs(y - y_ref))))

    print("KERNEL_OK")
</pallas_src>

<mosaic_0001>
module attributes {stable_mosaic.version = 11 : i64} {
  func.func @kernel(%arg0: memref<64x4xf32, #tpu.memory_space<vmem>>, %arg1: memref<4x128xf32, #tpu.memory_space<vmem>>, %arg2: memref<32x128xf32, #tpu.memory_space<vmem>>, %arg3: memref<1x128xf32, #tpu.memory_space<vmem>>, %arg4: memref<32x128xf32, #tpu.memory_space<vmem>>, %arg5: memref<32x128xf32, #tpu.memory_space<vmem>>, %arg6: memref<1x128xf32, #tpu.memory_space<vmem>>, %arg7: memref<32x1xf32, #tpu.memory_space<vmem>>, %arg8: memref<1x1xf32, #tpu.memory_space<vmem>>, %arg9: memref<64x1xf32, #tpu.memory_space<vmem>>) attributes {dimension_semantics = [], scalar_prefetch = 0 : i64, scratch_operands = 0 : i64, tpu.core_type = #tpu.core_type<tc>} {
    %c0 = arith.constant 0 : index
    %c0_0 = arith.constant 0 : index
    %0 = vector.load %arg1[%c0, %c0_0] : memref<4x128xf32, #tpu.memory_space<vmem>>, vector<4x128xf32>
    %c0_1 = arith.constant 0 : index
    %c0_2 = arith.constant 0 : index
    %1 = vector.load %arg4[%c0_1, %c0_2] : memref<32x128xf32, #tpu.memory_space<vmem>>, vector<32x128xf32>
    %c0_3 = arith.constant 0 : index
    %c0_4 = arith.constant 0 : index
    %2 = vector.load %arg2[%c0_3, %c0_4] : memref<32x128xf32, #tpu.memory_space<vmem>>, vector<32x128xf32>
    %c0_5 = arith.constant 0 : index
    %c0_6 = arith.constant 0 : index
    %3 = vector.load %arg5[%c0_5, %c0_6] : memref<32x128xf32, #tpu.memory_space<vmem>>, vector<32x128xf32>
    %c0_7 = arith.constant 0 : index
    %c0_8 = arith.constant 0 : index
    %4 = vector.load %arg3[%c0_7, %c0_8] : memref<1x128xf32, #tpu.memory_space<vmem>>, vector<1x128xf32>
    %c0_9 = arith.constant 0 : index
    %c0_10 = arith.constant 0 : index
    %5 = vector.load %arg6[%c0_9, %c0_10] : memref<1x128xf32, #tpu.memory_space<vmem>>, vector<1x128xf32>
    %c0_11 = arith.constant 0 : index
    %c0_12 = arith.constant 0 : index
    %6 = vector.load %arg0[%c0_11, %c0_12] : memref<64x4xf32, #tpu.memory_space<vmem>>, vector<64x4xf32>
    %cst = arith.constant dense<0.000000e+00> : vector<64x128xf32>
    %7 = tpu.matmul %6, %0, %cst {dimension_numbers = #tpu.dot_dimension_numbers<[1], [0], [0], [1], [0, 0, 1, 1], [], []>} : vector<64x4xf32>, vector<4x128xf32>, vector<64x128xf32> -> vector<64x128xf32>
    %8 = vector.broadcast %4 : vector<1x128xf32> to vector<64x128xf32>
    %9 = arith.addf %7, %8 : vector<64x128xf32>
    %cst_13 = arith.constant 0.000000e+00 : f32
    %10 = vector.broadcast %cst_13 : f32 to vector<8x32xf32>
    %11 = vector.extract_strided_slice %9 {offsets = [0, 0], sizes = [8, 128], strides = [1, 1]} : vector<64x128xf32> to vector<8x128xf32>
    %cst_14 = arith.constant dense<0.000000e+00> : vector<8x128xf32>
    %12 = tpu.matmul %10, %2, %cst_14 {dimension_numbers = #tpu.dot_dimension_numbers<[1], [0], [0], [1], [0, 0, 1, 1], [], []>} : vector<8x32xf32>, vector<32x128xf32>, vector<8x128xf32> -> vector<8x128xf32>
    %13 = arith.addf %11, %12 : vector<8x128xf32>
    %14 = vector.extract_strided_slice %13 {offsets = [0, 0], sizes = [8, 96], strides = [1, 1]} : vector<8x128xf32> to vector<8x96xf32>
    %15 = arith.negf %14 : vector<8x96xf32>
    %16 = math.exp %15 : vector<8x96xf32>
    %cst_15 = arith.constant 1.000000e+00 : f32
    %17 = vector.broadcast %cst_15 : f32 to vector<8x96xf32>
    %18 = arith.addf %17, %16 : vector<8x96xf32>
    %19 = arith.divf %17, %18 : vector<8x96xf32>
    %20 = vector.extract_strided_slice %19 {offsets = [0, 0], sizes = [8, 32], strides = [1, 1]} : vector<8x96xf32> to vector<8x32xf32>
    %21 = vector.extract_strided_slice %19 {offsets = [0, 32], sizes = [8, 32], strides = [1, 1]} : vector<8x96xf32> to vector<8x32xf32>
    %22 = vector.extract_strided_slice %19 {offsets = [0, 64], sizes = [8, 32], strides = [1, 1]} : vector<8x96xf32> to vector<8x32xf32>
    %23 = vector.extract_strided_slice %13 {offsets = [0, 96], sizes = [8, 32], strides = [1, 1]} : vector<8x128xf32> to vector<8x32xf32>
    %24 = math.tanh %23 : vector<8x32xf32>
    %25 = arith.mulf %21, %10 : vector<8x32xf32>
    %26 = arith.mulf %20, %24 : vector<8x32xf32>
    %27 = arith.addf %25, %26 : vector<8x32xf32>
    %28 = math.tanh %27 : vector<8x32xf32>
    %29 = arith.mulf %22, %28 : vector<8x32xf32>
    %30 = vector.extract_strided_slice %9 {offsets = [8, 0], sizes = [8, 128], strides = [1, 1]} : vector<64x128xf32> to vector<8x128xf32>
    %cst_16 = arith.constant dense<0.000000e+00> : vector<8x128xf32>
    %31 = tpu.matmul %29, %2, %cst_16 {dimension_numbers = #tpu.dot_dimension_numbers<[1], [0], [0], [1], [0, 0, 1, 1], [], []>} : vector<8x32xf32>, vector<32x128xf32>, vector<8x128xf32> -> vector<8x128xf32>
    %32 = arith.addf %30, %31 : vector<8x128xf32>
    %33 = vector.extract_strided_slice %32 {offsets = [0, 0], sizes = [8, 96], strides = [1, 1]} : vector<8x128xf32> to vector<8x96xf32>
    %34 = arith.negf %33 : vector<8x96xf32>
    %35 = math.exp %34 : vector<8x96xf32>
    %cst_17 = arith.constant 1.000000e+00 : f32
    %36 = vector.broadcast %cst_17 : f32 to vector<8x96xf32>
    %37 = arith.addf %36, %35 : vector<8x96xf32>
    %38 = arith.divf %36, %37 : vector<8x96xf32>
    %39 = vector.extract_strided_slice %38 {offsets = [0, 0], sizes = [8, 32], strides = [1, 1]} : vector<8x96xf32> to vector<8x32xf32>
    %40 = vector.extract_strided_slice %38 {offsets = [0, 32], sizes = [8, 32], strides = [1, 1]} : vector<8x96xf32> to vector<8x32xf32>
    %41 = vector.extract_strided_slice %38 {offsets = [0, 64], sizes = [8, 32], strides = [1, 1]} : vector<8x96xf32> to vector<8x32xf32>
    %42 = vector.extract_strided_slice %32 {offsets = [0, 96], sizes = [8, 32], strides = [1, 1]} : vector<8x128xf32> to vector<8x32xf32>
    %43 = math.tanh %42 : vector<8x32xf32>
    %44 = arith.mulf %40, %27 : vector<8x32xf32>
    %45 = arith.mulf %39, %43 : vector<8x32xf32>
    %46 = arith.addf %44, %45 : vector<8x32xf32>
    %47 = math.tanh %46 : vector<8x32xf32>
    %48 = arith.mulf %41, %47 : vector<8x32xf32>
    %cst_18 = arith.constant dense<0.000000e+00> : vector<8x128xf32>
    %49 = tpu.matmul %29, %1, %cst_18 {dimension_numbers = #tpu.dot_dimension_numbers<[1], [0], [0], [1], [0, 0, 1, 1], [], []>} : vector<8x32xf32>, vector<32x128xf32>, vector<8x128xf32> -> vector<8x128xf32>
    %cst_19 = arith.constant dense<0.000000e+00> : vector<8x128xf32>
    %50 = tpu.matmul %10, %3, %cst_19 {dimension_numbers = #tpu.dot_dimension_numbers<[1], [0], [0], [1], [0, 0, 1, 1], [], []>} : vector<8x32xf32>, vector<32x128xf32>, vector<8x128xf32> -> vector<8x128xf32>
    %51 = arith.addf %49, %50 : vector<8x128xf32>
    %52 = vector.broadcast %5 : vector<1x128xf32> to vector<8x128xf32>
    %53 = arith.addf %51, %52 : vector<8x128xf32>
    %54 = vector.extract_strided_slice %53 {offsets = [0, 0], sizes = [8, 96], strides = [1, 1]} : vector<8x128xf32> to vector<8x96xf32>
    %55 = arith.negf %54 : vector<8x96xf32>
    %56 = math.exp %55 : vector<8x96xf32>
    %cst_20 = arith.constant 1.000000e+00 : f32
    %57 = vector.broadcast %cst_20 : f32 to vector<8x96xf32>
    %58 = arith.addf %57, %56 : vector<8x96xf32>
    %59 = arith.divf %57, %58 : vector<8x96xf32>
    %60 = vector.extract_strided_slice %59 {offsets = [0, 0], sizes = [8, 32], strides = [1, 1]} : vector<8x96xf32> to vector<8x32xf32>
    %61 = vector.extract_strided_slice %59 {offsets = [0, 32], sizes = [8, 32], strides = [1, 1]} : vector<8x96xf32> to vector<8x32xf32>
    %62 = vector.extract_strided_slice %59 {offsets = [0, 64], sizes = [8, 32], strides = [1, 1]} : vector<8x96xf32> to vector<8x32xf32>
    %63 = vector.extract_strided_slice %53 {offsets = [0, 96], sizes = [8, 32], strides = [1, 1]} : vector<8x128xf32> to vector<8x32xf32>
    %64 = math.tanh %63 : vector<8x32xf32>
    %65 = arith.mulf %61, %10 : vector<8x32xf32>
    %66 = arith.mulf %60, %64 : vector<8x32xf32>
    %67 = arith.addf %65, %66 : vector<8x32xf32>
    %68 = math.tanh %67 : vector<8x32xf32>
    %69 = arith.mulf %62, %68 : vector<8x32xf32>
    %70 = vector.extract_strided_slice %9 {offsets = [16, 0], sizes = [8, 128], strides = [1, 1]} : vector<64x128xf32> to vector<8x128xf32>
    %cst_21 = arith.constant dense<0.000000e+00> : vector<8x128xf32>
    %71 = tpu.matmul %48, %2, %cst_21 {dimension_numbers = #tpu.dot_dimension_numbers<[1], [0], [0], [1], [0, 0, 1, 1], [], []>} : vector<8x32xf32>, vector<32x128xf32>, vector<8x128xf32> -> vector<8x128xf32>
    %72 = arith.addf %70, %71 : vector<8x128xf32>
    %73 = vector.extract_strided_slice %72 {offsets = [0, 0], sizes = [8, 96], strides = [1, 1]} : vector<8x128xf32> to vector<8x96xf32>
    %74 = arith.negf %73 : vector<8x96xf32>
    %75 = math.exp %74 : vector<8x96xf32>
    %cst_22 = arith.constant 1.000000e+00 : f32
    %76 = vector.broadcast %cst_22 : f32 to vector<8x96xf32>
    %77 = arith.addf %76, %75 : vector<8x96xf32>
    %78 = arith.divf %76, %77 : vector<8x96xf32>
    %79 = vector.extract_strided_slice %78 {offsets = [0, 0], sizes = [8, 32], strides = [1, 1]} : vector<8x96xf32> to vector<8x32xf32>
    %80 = vector.extract_strided_slice %78 {offsets = [0, 32], sizes = [8, 32], strides = [1, 1]} : vector<8x96xf32> to vector<8x32xf32>
    %81 = vector.extract_strided_slice %78 {offsets = [0, 64], sizes = [8, 32], strides = [1, 1]} : vector<8x96xf32> to vector<8x32xf32>
    %82 = vector.extract_strided_slice %72 {offsets = [0, 96], sizes = [8, 32], strides = [1, 1]} : vector<8x128xf32> to vector<8x32xf32>
    %83 = math.tanh %82 : vector<8x32xf32>
    %84 = arith.mulf %80, %46 : vector<8x32xf32>
    %85 = arith.mulf %79, %83 : vector<8x32xf32>
    %86 = arith.addf %84, %85 : vector<8x32xf32>
    %87 = math.tanh %86 : vector<8x32xf32>
    %88 = arith.mulf %81, %87 : vector<8x32xf32>
    %cst_23 = arith.constant dense<0.000000e+00> : vector<8x128xf32>
    %89 = tpu.matmul %48, %1, %cst_23 {dimension_numbers = #tpu.dot_dimension_numbers<[1], [0], [0], [1], [0, 0, 1, 1], [], []>} : vector<8x32xf32>, vector<32x128xf32>, vector<8x128xf32> -> vector<8x128xf32>
    %cst_24 = arith.constant dense<0.000000e+00> : vector<8x128xf32>
    %90 = tpu.matmul %69, %3, %cst_24 {dimension_numbers = #tpu.dot_dimension_numbers<[1], [0], [0], [1], [0, 0, 1, 1], [], []>} : vector<8x32xf32>, vector<32x128xf32>, vector<8x128xf32> -> vector<8x128xf32>
    %91 = arith.addf %89, %90 : vector<8x128xf32>
    %92 = vector.broadcast %5 : vector<1x128xf32> to vector<8x128xf32>
    %93 = arith.addf %91, %92 : vector<8x128xf32>
    %94 = vector.extract_strided_slice %93 {offsets = [0, 0], sizes = [8, 96], strides = [1, 1]} : vector<8x128xf32> to vector<8x96xf32>
    %95 = arith.negf %94 : vector<8x96xf32>
    %96 = math.exp %95 : vector<8x96xf32>
    %cst_25 = arith.constant 1.000000e+00 : f32
    %97 = vector.broadcast %cst_25 : f32 to vector<8x96xf32>
    %98 = arith.addf %97, %96 : vector<8x96xf32>
    %99 = arith.divf %97, %98 : vector<8x96xf32>
    %100 = vector.extract_strided_slice %99 {offsets = [0, 0], sizes = [8, 32], strides = [1, 1]} : vector<8x96xf32> to vector<8x32xf32>
    %101 = vector.extract_strided_slice %99 {offsets = [0, 32], sizes = [8, 32], strides = [1, 1]} : vector<8x96xf32> to vector<8x32xf32>
    %102 = vector.extract_strided_slice %99 {offsets = [0, 64], sizes = [8, 32], strides = [1, 1]} : vector<8x96xf32> to vector<8x32xf32>
    %103 = vector.extract_strided_slice %93 {offsets = [0, 96], sizes = [8, 32], strides = [1, 1]} : vector<8x128xf32> to vector<8x32xf32>
    %104 = math.tanh %103 : vector<8x32xf32>
    %105 = arith.mulf %101, %67 : vector<8x32xf32>
    %106 = arith.mulf %100, %104 : vector<8x32xf32>
    %107 = arith.addf %105, %106 : vector<8x32xf32>
    %108 = math.tanh %107 : vector<8x32xf32>
    %109 = arith.mulf %102, %108 : vector<8x32xf32>
    %110 = vector.extract_strided_slice %9 {offsets = [24, 0], sizes = [8, 128], strides = [1, 1]} : vector<64x128xf32> to vector<8x128xf32>
    %cst_26 = arith.constant dense<0.000000e+00> : vector<8x128xf32>
    %111 = tpu.matmul %88, %2, %cst_26 {dimension_numbers = #tpu.dot_dimension_numbers<[1], [0], [0], [1], [0, 0, 1, 1], [], []>} : vector<8x32xf32>, vector<32x128xf32>, vector<8x128xf32> -> vector<8x128xf32>
    %112 = arith.addf %110, %111 : vector<8x128xf32>
    %113 = vector.extract_strided_slice %112 {offsets = [0, 0], sizes = [8, 96], strides = [1, 1]} : vector<8x128xf32> to vector<8x96xf32>
    %114 = arith.negf %113 : vector<8x96xf32>
    %115 = math.exp %114 : vector<8x96xf32>
    %cst_27 = arith.constant 1.000000e+00 : f32
    %116 = vector.broadcast %cst_27 : f32 to vector<8x96xf32>
    %117 = arith.addf %116, %115 : vector<8x96xf32>
    %118 = arith.divf %116, %117 : vector<8x96xf32>
    %119 = vector.extract_strided_slice %118 {offsets = [0, 0], sizes = [8, 32], strides = [1, 1]} : vector<8x96xf32> to vector<8x32xf32>
    %120 = vector.extract_strided_slice %118 {offsets = [0, 32], sizes = [8, 32], strides = [1, 1]} : vector<8x96xf32> to vector<8x32xf32>
    %121 = vector.extract_strided_slice %118 {offsets = [0, 64], sizes = [8, 32], strides = [1, 1]} : vector<8x96xf32> to vector<8x32xf32>
    %122 = vector.extract_strided_slice %112 {offsets = [0, 96], sizes = [8, 32], strides = [1, 1]} : vector<8x128xf32> to vector<8x32xf32>
    %123 = math.tanh %122 : vector<8x32xf32>
    %124 = arith.mulf %120, %86 : vector<8x32xf32>
    %125 = arith.mulf %119, %123 : vector<8x32xf32>
    %126 = arith.addf %124, %125 : vector<8x32xf32>
    %127 = math.tanh %126 : vector<8x32xf32>
    %128 = arith.mulf %121, %127 : vector<8x32xf32>
    %cst_28 = arith.constant dense<0.000000e+00> : vector<8x128xf32>
    %129 = tpu.matmul %88, %1, %cst_28 {dimension_numbers = #tpu.dot_dimension_numbers<[1], [0], [0], [1], [0, 0, 1, 1], [], []>} : vector<8x32xf32>, vector<32x128xf32>, vector<8x128xf32> -> vector<8x128xf32>
    %cst_29 = arith.constant dense<0.000000e+00> : vector<8x128xf32>
    %130 = tpu.matmul %109, %3, %cst_29 {dimension_numbers = #tpu.dot_dimension_numbers<[1], [0], [0], [1], [0, 0, 1, 1], [], []>} : vector<8x32xf32>, vector<32x128xf32>, vector<8x128xf32> -> vector<8x128xf32>
    %131 = arith.addf %129, %130 : vector<8x128xf32>
    %132 = vector.broadcast %5 : vector<1x128xf32> to vector<8x128xf32>
    %133 = arith.addf %131, %132 : vector<8x128xf32>
    %134 = vector.extract_strided_slice %133 {offsets = [0, 0], sizes = [8, 96], strides = [1, 1]} : vector<8x128xf32> to vector<8x96xf32>
    %135 = arith.negf %134 : vector<8x96xf32>
    %136 = math.exp %135 : vector<8x96xf32>
    %cst_30 = arith.constant 1.000000e+00 : f32
    %137 = vector.broadcast %cst_30 : f32 to vector<8x96xf32>
    %138 = arith.addf %137, %136 : vector<8x96xf32>
    %139 = arith.divf %137, %138 : vector<8x96xf32>
    %140 = vector.extract_strided_slice %139 {offsets = [0, 0], sizes = [8, 32], strides = [1, 1]} : vector<8x96xf32> to vector<8x32xf32>
    %141 = vector.extract_strided_slice %139 {offsets = [0, 32], sizes = [8, 32], strides = [1, 1]} : vector<8x96xf32> to vector<8x32xf32>
    %142 = vector.extract_strided_slice %139 {offsets = [0, 64], sizes = [8, 32], strides = [1, 1]} : vector<8x96xf32> to vector<8x32xf32>
    %143 = vector.extract_strided_slice %133 {offsets = [0, 96], sizes = [8, 32], strides = [1, 1]} : vector<8x128xf32> to vector<8x32xf32>
    %144 = math.tanh %143 : vector<8x32xf32>
    %145 = arith.mulf %141, %107 : vector<8x32xf32>
    %146 = arith.mulf %140, %144 : vector<8x32xf32>
    %147 = arith.addf %145, %146 : vector<8x32xf32>
    %148 = math.tanh %147 : vector<8x32xf32>
    %149 = arith.mulf %142, %148 : vector<8x32xf32>
    %150 = vector.extract_strided_slice %9 {offsets = [32, 0], sizes = [8, 128], strides = [1, 1]} : vector<64x128xf32> to vector<8x128xf32>
    %cst_31 = arith.constant dense<0.000000e+00> : vector<8x128xf32>
    %151 = tpu.matmul %128, %2, %cst_31 {dimension_numbers = #tpu.dot_dimension_numbers<[1], [0], [0], [1], [0, 0, 1, 1], [], []>} : vector<8x32xf32>, vector<32x128xf32>, vector<8x128xf32> -> vector<8x128xf32>
    %152 = arith.addf %150, %151 : vector<8x128xf32>
    %153 = vector.extract_strided_slice %152 {offsets = [0, 0], sizes = [8, 96], strides = [1, 1]} : vector<8x128xf32> to vector<8x96xf32>
    %154 = arith.negf %153 : vector<8x96xf32>
    %155 = math.exp %154 : vector<8x96xf32>
    %cst_32 = arith.constant 1.000000e+00 : f32
    %156 = vector.broadcast %cst_32 : f32 to vector<8x96xf32>
    %157 = arith.addf %156, %155 : vector<8x96xf32>
    %158 = arith.divf %156, %157 : vector<8x96xf32>
    %159 = vector.extract_strided_slice %158 {offsets = [0, 0], sizes = [8, 32], strides = [1, 1]} : vector<8x96xf32> to vector<8x32xf32>
    %160 = vector.extract_strided_slice %158 {offsets = [0, 32], sizes = [8, 32], strides = [1, 1]} : vector<8x96xf32> to vector<8x32xf32>
    %161 = vector.extract_strided_slice %158 {offsets = [0, 64], sizes = [8, 32], strides = [1, 1]} : vector<8x96xf32> to vector<8x32xf32>
    %162 = vector.extract_strided_slice %152 {offsets = [0, 96], sizes = [8, 32], strides = [1, 1]} : vector<8x128xf32> to vector<8x32xf32>
    %163 = math.tanh %162 : vector<8x32xf32>
    %164 = arith.mulf %160, %126 : vector<8x32xf32>
    %165 = arith.mulf %159, %163 : vector<8x32xf32>
    %166 = arith.addf %164, %165 : vector<8x32xf32>
    %167 = math.tanh %166 : vector<8x32xf32>
    %168 = arith.mulf %161, %167 : vector<8x32xf32>
    %cst_33 = arith.constant dense<0.000000e+00> : vector<8x128xf32>
    %169 = tpu.matmul %128, %1, %cst_33 {dimension_numbers = #tpu.dot_dimension_numbers<[1], [0], [0], [1], [0, 0, 1, 1], [], []>} : vector<8x32xf32>, vector<32x128xf32>, vector<8x128xf32> -> vector<8x128xf32>
    %cst_34 = arith.constant dense<0.000000e+00> : vector<8x128xf32>
    %170 = tpu.matmul %149, %3, %cst_34 {dimension_numbers = #tpu.dot_dimension_numbers<[1], [0], [0], [1], [0, 0, 1, 1], [], []>} : vector<8x32xf32>, vector<32x128xf32>, vector<8x128xf32> -> vector<8x128xf32>
    %171 = arith.addf %169, %170 : vector<8x128xf32>
    %172 = vector.broadcast %5 : vector<1x128xf32> to vector<8x128xf32>
    %173 = arith.addf %171, %172 : vector<8x128xf32>
    %174 = vector.extract_strided_slice %173 {offsets = [0, 0], sizes = [8, 96], strides = [1, 1]} : vector<8x128xf32> to vector<8x96xf32>
    %175 = arith.negf %174 : vector<8x96xf32>
    %176 = math.exp %175 : vector<8x96xf32>
    %cst_35 = arith.constant 1.000000e+00 : f32
    %177 = vector.broadcast %cst_35 : f32 to vector<8x96xf32>
    %178 = arith.addf %177, %176 : vector<8x96xf32>
    %179 = arith.divf %177, %178 : vector<8x96xf32>
    %180 = vector.extract_strided_slice %179 {offsets = [0, 0], sizes = [8, 32], strides = [1, 1]} : vector<8x96xf32> to vector<8x32xf32>
    %181 = vector.extract_strided_slice %179 {offsets = [0, 32], sizes = [8, 32], strides = [1, 1]} : vector<8x96xf32> to vector<8x32xf32>
    %182 = vector.extract_strided_slice %179 {offsets = [0, 64], sizes = [8, 32], strides = [1, 1]} : vector<8x96xf32> to vector<8x32xf32>
    %183 = vector.extract_strided_slice %173 {offsets = [0, 96], sizes = [8, 32], strides = [1, 1]} : vector<8x128xf32> to vector<8x32xf32>
    %184 = math.tanh %183 : vector<8x32xf32>
    %185 = arith.mulf %181, %147 : vector<8x32xf32>
    %186 = arith.mulf %180, %184 : vector<8x32xf32>
    %187 = arith.addf %185, %186 : vector<8x32xf32>
    %188 = math.tanh %187 : vector<8x32xf32>
    %189 = arith.mulf %182, %188 : vector<8x32xf32>
    %190 = vector.extract_strided_slice %9 {offsets = [40, 0], sizes = [8, 128], strides = [1, 1]} : vector<64x128xf32> to vector<8x128xf32>
    %cst_36 = arith.constant dense<0.000000e+00> : vector<8x128xf32>
    %191 = tpu.matmul %168, %2, %cst_36 {dimension_numbers = #tpu.dot_dimension_numbers<[1], [0], [0], [1], [0, 0, 1, 1], [], []>} : vector<8x32xf32>, vector<32x128xf32>, vector<8x128xf32> -> vector<8x128xf32>
    %192 = arith.addf %190, %191 : vector<8x128xf32>
    %193 = vector.extract_strided_slice %192 {offsets = [0, 0], sizes = [8, 96], strides = [1, 1]} : vector<8x128xf32> to vector<8x96xf32>
    %194 = arith.negf %193 : vector<8x96xf32>
    %195 = math.exp %194 : vector<8x96xf32>
    %cst_37 = arith.constant 1.000000e+00 : f32
    %196 = vector.broadcast %cst_37 : f32 to vector<8x96xf32>
    %197 = arith.addf %196, %195 : vector<8x96xf32>
    %198 = arith.divf %196, %197 : vector<8x96xf32>
    %199 = vector.extract_strided_slice %198 {offsets = [0, 0], sizes = [8, 32], strides = [1, 1]} : vector<8x96xf32> to vector<8x32xf32>
    %200 = vector.extract_strided_slice %198 {offsets = [0, 32], sizes = [8, 32], strides = [1, 1]} : vector<8x96xf32> to vector<8x32xf32>
    %201 = vector.extract_strided_slice %198 {offsets = [0, 64], sizes = [8, 32], strides = [1, 1]} : vector<8x96xf32> to vector<8x32xf32>
    %202 = vector.extract_strided_slice %192 {offsets = [0, 96], sizes = [8, 32], strides = [1, 1]} : vector<8x128xf32> to vector<8x32xf32>
    %203 = math.tanh %202 : vector<8x32xf32>
    %204 = arith.mulf %200, %166 : vector<8x32xf32>
    %205 = arith.mulf %199, %203 : vector<8x32xf32>
    %206 = arith.addf %204, %205 : vector<8x32xf32>
    %207 = math.tanh %206 : vector<8x32xf32>
    %208 = arith.mulf %201, %207 : vector<8x32xf32>
    %cst_38 = arith.constant dense<0.000000e+00> : vector<8x128xf32>
    %209 = tpu.matmul %168, %1, %cst_38 {dimension_numbers = #tpu.dot_dimension_numbers<[1], [0], [0], [1], [0, 0, 1, 1], [], []>} : vector<8x32xf32>, vector<32x128xf32>, vector<8x128xf32> -> vector<8x128xf32>
    %cst_39 = arith.constant dense<0.000000e+00> : vector<8x128xf32>
    %210 = tpu.matmul %189, %3, %cst_39 {dimension_numbers = #tpu.dot_dimension_numbers<[1], [0], [0], [1], [0, 0, 1, 1], [], []>} : vector<8x32xf32>, vector<32x128xf32>, vector<8x128xf32> -> vector<8x128xf32>
    %211 = arith.addf %209, %210 : vector<8x128xf32>
    %212 = vector.broadcast %5 : vector<1x128xf32> to vector<8x128xf32>
    %213 = arith.addf %211, %212 : vector<8x128xf32>
    %214 = vector.extract_strided_slice %213 {offsets = [0, 0], sizes = [8, 96], strides = [1, 1]} : vector<8x128xf32> to vector<8x96xf32>
    %215 = arith.negf %214 : vector<8x96xf32>
    %216 = math.exp %215 : vector<8x96xf32>
    %cst_40 = arith.constant 1.000000e+00 : f32
    %217 = vector.broadcast %cst_40 : f32 to vector<8x96xf32>
    %218 = arith.addf %217, %216 : vector<8x96xf32>
    %219 = arith.divf %217, %218 : vector<8x96xf32>
    %220 = vector.extract_strided_slice %219 {offsets = [0, 0], sizes = [8, 32], strides = [1, 1]} : vector<8x96xf32> to vector<8x32xf32>
    %221 = vector.extract_strided_slice %219 {offsets = [0, 32], sizes = [8, 32], strides = [1, 1]} : vector<8x96xf32> to vector<8x32xf32>
    %222 = vector.extract_strided_slice %219 {offsets = [0, 64], sizes = [8, 32], strides = [1, 1]} : vector<8x96xf32> to vector<8x32xf32>
    %223 = vector.extract_strided_slice %213 {offsets = [0, 96], sizes = [8, 32], strides = [1, 1]} : vector<8x128xf32> to vector<8x32xf32>
    %224 = math.tanh %223 : vector<8x32xf32>
    %225 = arith.mulf %221, %187 : vector<8x32xf32>
    %226 = arith.mulf %220, %224 : vector<8x32xf32>
    %227 = arith.addf %225, %226 : vector<8x32xf32>
    %228 = math.tanh %227 : vector<8x32xf32>
    %229 = arith.mulf %222, %228 : vector<8x32xf32>
    %230 = vector.extract_strided_slice %9 {offsets = [48, 0], sizes = [8, 128], strides = [1, 1]} : vector<64x128xf32> to vector<8x128xf32>
    %cst_41 = arith.constant dense<0.000000e+00> : vector<8x128xf32>
    %231 = tpu.matmul %208, %2, %cst_41 {dimension_numbers = #tpu.dot_dimension_numbers<[1], [0], [0], [1], [0, 0, 1, 1], [], []>} : vector<8x32xf32>, vector<32x128xf32>, vector<8x128xf32> -> vector<8x128xf32>
    %232 = arith.addf %230, %231 : vector<8x128xf32>
    %233 = vector.extract_strided_slice %232 {offsets = [0, 0], sizes = [8, 96], strides = [1, 1]} : vector<8x128xf32> to vector<8x96xf32>
    %234 = arith.negf %233 : vector<8x96xf32>
    %235 = math.exp %234 : vector<8x96xf32>
    %cst_42 = arith.constant 1.000000e+00 : f32
    %236 = vector.broadcast %cst_42 : f32 to vector<8x96xf32>
    %237 = arith.addf %236, %235 : vector<8x96xf32>
    %238 = arith.divf %236, %237 : vector<8x96xf32>
    %239 = vector.extract_strided_slice %238 {offsets = [0, 0], sizes = [8, 32], strides = [1, 1]} : vector<8x96xf32> to vector<8x32xf32>
    %240 = vector.extract_strided_slice %238 {offsets = [0, 32], sizes = [8, 32], strides = [1, 1]} : vector<8x96xf32> to vector<8x32xf32>
    %241 = vector.extract_strided_slice %238 {offsets = [0, 64], sizes = [8, 32], strides = [1, 1]} : vector<8x96xf32> to vector<8x32xf32>
    %242 = vector.extract_strided_slice %232 {offsets = [0, 96], sizes = [8, 32], strides = [1, 1]} : vector<8x128xf32> to vector<8x32xf32>
    %243 = math.tanh %242 : vector<8x32xf32>
    %244 = arith.mulf %240, %206 : vector<8x32xf32>
    %245 = arith.mulf %239, %243 : vector<8x32xf32>
    %246 = arith.addf %244, %245 : vector<8x32xf32>
    %247 = math.tanh %246 : vector<8x32xf32>
    %248 = arith.mulf %241, %247 : vector<8x32xf32>
    %cst_43 = arith.constant dense<0.000000e+00> : vector<8x128xf32>
    %249 = tpu.matmul %208, %1, %cst_43 {dimension_numbers = #tpu.dot_dimension_numbers<[1], [0], [0], [1], [0, 0, 1, 1], [], []>} : vector<8x32xf32>, vector<32x128xf32>, vector<8x128xf32> -> vector<8x128xf32>
    %cst_44 = arith.constant dense<0.000000e+00> : vector<8x128xf32>
    %250 = tpu.matmul %229, %3, %cst_44 {dimension_numbers = #tpu.dot_dimension_numbers<[1], [0], [0], [1], [0, 0, 1, 1], [], []>} : vector<8x32xf32>, vector<32x128xf32>, vector<8x128xf32> -> vector<8x128xf32>
    %251 = arith.addf %249, %250 : vector<8x128xf32>
    %252 = vector.broadcast %5 : vector<1x128xf32> to vector<8x128xf32>
    %253 = arith.addf %251, %252 : vector<8x128xf32>
    %254 = vector.extract_strided_slice %253 {offsets = [0, 0], sizes = [8, 96], strides = [1, 1]} : vector<8x128xf32> to vector<8x96xf32>
    %255 = arith.negf %254 : vector<8x96xf32>
    %256 = math.exp %255 : vector<8x96xf32>
    %cst_45 = arith.constant 1.000000e+00 : f32
    %257 = vector.broadcast %cst_45 : f32 to vector<8x96xf32>
    %258 = arith.addf %257, %256 : vector<8x96xf32>
    %259 = arith.divf %257, %258 : vector<8x96xf32>
    %260 = vector.extract_strided_slice %259 {offsets = [0, 0], sizes = [8, 32], strides = [1, 1]} : vector<8x96xf32> to vector<8x32xf32>
    %261 = vector.extract_strided_slice %259 {offsets = [0, 32], sizes = [8, 32], strides = [1, 1]} : vector<8x96xf32> to vector<8x32xf32>
    %262 = vector.extract_strided_slice %259 {offsets = [0, 64], sizes = [8, 32], strides = [1, 1]} : vector<8x96xf32> to vector<8x32xf32>
    %263 = vector.extract_strided_slice %253 {offsets = [0, 96], sizes = [8, 32], strides = [1, 1]} : vector<8x128xf32> to vector<8x32xf32>
    %264 = math.tanh %263 : vector<8x32xf32>
    %265 = arith.mulf %261, %227 : vector<8x32xf32>
    %266 = arith.mulf %260, %264 : vector<8x32xf32>
    %267 = arith.addf %265, %266 : vector<8x32xf32>
    %268 = math.tanh %267 : vector<8x32xf32>
    %269 = arith.mulf %262, %268 : vector<8x32xf32>
    %270 = vector.extract_strided_slice %9 {offsets = [56, 0], sizes = [8, 128], strides = [1, 1]} : vector<64x128xf32> to vector<8x128xf32>
    %cst_46 = arith.constant dense<0.000000e+00> : vector<8x128xf32>
    %271 = tpu.matmul %248, %2, %cst_46 {dimension_numbers = #tpu.dot_dimension_numbers<[1], [0], [0], [1], [0, 0, 1, 1], [], []>} : vector<8x32xf32>, vector<32x128xf32>, vector<8x128xf32> -> vector<8x128xf32>
    %272 = arith.addf %270, %271 : vector<8x128xf32>
    %273 = vector.extract_strided_slice %272 {offsets = [0, 0], sizes = [8, 96], strides = [1, 1]} : vector<8x128xf32> to vector<8x96xf32>
    %274 = arith.negf %273 : vector<8x96xf32>
    %275 = math.exp %274 : vector<8x96xf32>
    %cst_47 = arith.constant 1.000000e+00 : f32
    %276 = vector.broadcast %cst_47 : f32 to vector<8x96xf32>
    %277 = arith.addf %276, %275 : vector<8x96xf32>
    %278 = arith.divf %276, %277 : vector<8x96xf32>
    %279 = vector.extract_strided_slice %278 {offsets = [0, 0], sizes = [8, 32], strides = [1, 1]} : vector<8x96xf32> to vector<8x32xf32>
    %280 = vector.extract_strided_slice %278 {offsets = [0, 32], sizes = [8, 32], strides = [1, 1]} : vector<8x96xf32> to vector<8x32xf32>
    %281 = vector.extract_strided_slice %278 {offsets = [0, 64], sizes = [8, 32], strides = [1, 1]} : vector<8x96xf32> to vector<8x32xf32>
    %282 = vector.extract_strided_slice %272 {offsets = [0, 96], sizes = [8, 32], strides = [1, 1]} : vector<8x128xf32> to vector<8x32xf32>
    %283 = math.tanh %282 : vector<8x32xf32>
    %284 = arith.mulf %280, %246 : vector<8x32xf32>
    %285 = arith.mulf %279, %283 : vector<8x32xf32>
    %286 = arith.addf %284, %285 : vector<8x32xf32>
    %287 = math.tanh %286 : vector<8x32xf32>
    %288 = arith.mulf %281, %287 : vector<8x32xf32>
    %cst_48 = arith.constant dense<0.000000e+00> : vector<8x128xf32>
    %289 = tpu.matmul %248, %1, %cst_48 {dimension_numbers = #tpu.dot_dimension_numbers<[1], [0], [0], [1], [0, 0, 1, 1], [], []>} : vector<8x32xf32>, vector<32x128xf32>, vector<8x128xf32> -> vector<8x128xf32>
    %cst_49 = arith.constant dense<0.000000e+00> : vector<8x128xf32>
    %290 = tpu.matmul %269, %3, %cst_49 {dimension_numbers = #tpu.dot_dimension_numbers<[1], [0], [0], [1], [0, 0, 1, 1], [], []>} : vector<8x32xf32>, vector<32x128xf32>, vector<8x128xf32> -> vector<8x128xf32>
    %291 = arith.addf %289, %290 : vector<8x128xf32>
    %292 = vector.broadcast %5 : vector<1x128xf32> to vector<8x128xf32>
    %293 = arith.addf %291, %292 : vector<8x128xf32>
    %294 = vector.extract_strided_slice %293 {offsets = [0, 0], sizes = [8, 96], strides = [1, 1]} : vector<8x128xf32> to vector<8x96xf32>
    %295 = arith.negf %294 : vector<8x96xf32>
    %296 = math.exp %295 : vector<8x96xf32>
    %cst_50 = arith.constant 1.000000e+00 : f32
    %297 = vector.broadcast %cst_50 : f32 to vector<8x96xf32>
    %298 = arith.addf %297, %296 : vector<8x96xf32>
    %299 = arith.divf %297, %298 : vector<8x96xf32>
    %300 = vector.extract_strided_slice %299 {offsets = [0, 0], sizes = [8, 32], strides = [1, 1]} : vector<8x96xf32> to vector<8x32xf32>
    %301 = vector.extract_strided_slice %299 {offsets = [0, 32], sizes = [8, 32], strides = [1, 1]} : vector<8x96xf32> to vector<8x32xf32>
    %302 = vector.extract_strided_slice %299 {offsets = [0, 64], sizes = [8, 32], strides = [1, 1]} : vector<8x96xf32> to vector<8x32xf32>
    %303 = vector.extract_strided_slice %293 {offsets = [0, 96], sizes = [8, 32], strides = [1, 1]} : vector<8x128xf32> to vector<8x32xf32>
    %304 = math.tanh %303 : vector<8x32xf32>
    %305 = arith.mulf %301, %267 : vector<8x32xf32>
    %306 = arith.mulf %300, %304 : vector<8x32xf32>
    %307 = arith.addf %305, %306 : vector<8x32xf32>
    %308 = math.tanh %307 : vector<8x32xf32>
    %309 = arith.mulf %302, %308 : vector<8x32xf32>
    %cst_51 = arith.constant dense<0.000000e+00> : vector<8x128xf32>
    %310 = tpu.matmul %288, %1, %cst_51 {dimension_numbers = #tpu.dot_dimension_numbers<[1], [0], [0], [1], [0, 0, 1, 1], [], []>} : vector<8x32xf32>, vector<32x128xf32>, vector<8x128xf32> -> vector<8x128xf32>
    %cst_52 = arith.constant dense<0.000000e+00> : vector<8x128xf32>
    %311 = tpu.matmul %309, %3, %cst_52 {dimension_numbers = #tpu.dot_dimension_numbers<[1], [0], [0], [1], [0, 0, 1, 1], [], []>} : vector<8x32xf32>, vector<32x128xf32>, vector<8x128xf32> -> vector<8x128xf32>
    %312 = arith.addf %310, %311 : vector<8x128xf32>
    %313 = vector.broadcast %5 : vector<1x128xf32> to vector<8x128xf32>
    %314 = arith.addf %312, %313 : vector<8x128xf32>
    %315 = vector.extract_strided_slice %314 {offsets = [0, 0], sizes = [8, 96], strides = [1, 1]} : vector<8x128xf32> to vector<8x96xf32>
    %316 = arith.negf %315 : vector<8x96xf32>
    %317 = math.exp %316 : vector<8x96xf32>
    %cst_53 = arith.constant 1.000000e+00 : f32
    %318 = vector.broadcast %cst_53 : f32 to vector<8x96xf32>
    %319 = arith.addf %318, %317 : vector<8x96xf32>
    %320 = arith.divf %318, %319 : vector<8x96xf32>
    %321 = vector.extract_strided_slice %320 {offsets = [0, 0], sizes = [8, 32], strides = [1, 1]} : vector<8x96xf32> to vector<8x32xf32>
    %322 = vector.extract_strided_slice %320 {offsets = [0, 32], sizes = [8, 32], strides = [1, 1]} : vector<8x96xf32> to vector<8x32xf32>
    %323 = vector.extract_strided_slice %320 {offsets = [0, 64], sizes = [8, 32], strides = [1, 1]} : vector<8x96xf32> to vector<8x32xf32>
    %324 = vector.extract_strided_slice %314 {offsets = [0, 96], sizes = [8, 32], strides = [1, 1]} : vector<8x128xf32> to vector<8x32xf32>
    %325 = math.tanh %324 : vector<8x32xf32>
    %326 = arith.mulf %322, %307 : vector<8x32xf32>
    %327 = arith.mulf %321, %325 : vector<8x32xf32>
    %328 = arith.addf %326, %327 : vector<8x32xf32>
    %329 = math.tanh %328 : vector<8x32xf32>
    %330 = arith.mulf %323, %329 : vector<8x32xf32>
    %331 = tpu.concatenate %69, %109, %149, %189, %229, %269, %309, %330 in 0 : vector<8x32xf32>, vector<8x32xf32>, vector<8x32xf32>, vector<8x32xf32>, vector<8x32xf32>, vector<8x32xf32>, vector<8x32xf32>, vector<8x32xf32> -> vector<64x32xf32>
    %c0_54 = arith.constant 0 : index
    %c0_55 = arith.constant 0 : index
    %332 = vector.load %arg7[%c0_54, %c0_55] : memref<32x1xf32, #tpu.memory_space<vmem>>, vector<32x1xf32>
    %cst_56 = arith.constant dense<0.000000e+00> : vector<64x1xf32>
    %333 = tpu.matmul %331, %332, %cst_56 {dimension_numbers = #tpu.dot_dimension_numbers<[1], [0], [0], [1], [0, 0, 1, 1], [], []>} : vector<64x32xf32>, vector<32x1xf32>, vector<64x1xf32> -> vector<64x1xf32>
    %c0_57 = arith.constant 0 : index
    %c0_58 = arith.constant 0 : index
    %334 = vector.load %arg8[%c0_57, %c0_58] : memref<1x1xf32, #tpu.memory_space<vmem>>, vector<1x1xf32>
    %335 = vector.broadcast %334 : vector<1x1xf32> to vector<64x1xf32>
    %336 = arith.addf %333, %335 : vector<64x1xf32>
    %c0_59 = arith.constant 0 : index
    %c0_60 = arith.constant 0 : index
    %337 = vector.load %arg9[%c0_59, %c0_60] : memref<64x1xf32, #tpu.memory_space<vmem>>, vector<64x1xf32>
    tpu.vector_store %arg9[%c0_59, %c0_60], %336 {strides = array<i32>} : memref<64x1xf32, #tpu.memory_space<vmem>>, vector<64x1xf32>,
    return
  }
}

</mosaic_0001>

<bundles_post_ra>
// kernel: lstm_model_forward.1
= control target key start
LH: loop header
LB: loop body
LE: loop exit
PB: predicated region body
PF: predicated region fallthrough
CT: control target
= control target key end

     0   :  { %vm88_vm0 = vcmask 1043456   ;;  %vm63_vm1 = vcmask 31744   ;;  %v3280_v8 = vmov 0.0|0.0   ;;  %vm3281_vm2 = vmmov 0   ;;  %s3283_s10 = smov 32   ;;  %s3836_s1 = inlined_call_operand.vmem [shape: f32[4,128], index: 1, kind: input, shape index: {}]   ;;  %s3837_s0 = inlined_call_operand.vmem [shape: f32[64,4], index: 0, kind: input, shape index: {}]   ;;  %s3838_s2 = inlined_call_operand.vmem [shape: f32[32,128], index: 2, kind: input, shape index: {}]   ;;  %s3839_s3 = inlined_call_operand.vmem [shape: f32[1,128], index: 3, kind: input, shape index: {}]   ;;  %s3840_s5 = inlined_call_operand.vmem [shape: f32[32,128], index: 5, kind: input, shape index: {}]   ;;  %s3841_s4 = inlined_call_operand.vmem [shape: f32[32,128], index: 4, kind: input, shape index: {}]   ;;  %s3842_s6 = inlined_call_operand.vmem [shape: f32[1,128], index: 6, kind: input, shape index: {}]   ;;  %s3843_s7 = inlined_call_operand.vmem [shape: f32[32,1], index: 7, kind: input, shape index: {}]   ;;  %s3844_s8 = inlined_call_operand.<no memory space> [shape: f32[1,1], index: 8, kind: input, shape index: {}]   ;;  %s3845_s9 = inlined_call_operand.vmem [shape: f32[64,1], index: 9, kind: output, shape index: {}]  }
   0x1   :  { %v34_v0 = vld [vmem:[%s3836_s1] sm:$0xf]  ;;  %v54_v2 = vld [vmem:[%s3837_s0 + $0x28] sm:$0xff]  ;;  %v55_v5 = vld [vmem:[%s3837_s0 + $0x30] sm:$0xff]  ;;  %v3282_v14 = vmov 0.0   ;;  %vm197_vm3 = vcmask 261120  }
   0x2   :  { %v53_v1 = vld [vmem:[%s3837_s0 + $0x20] sm:$0xff]  ;;  %3145 = vmatprep.subr.msk.mxu1 %vm88_vm0, %v34_v0  ;;  %v40_v4 = vld [vmem:[%s3838_s2 + $0x8] sm:$0xff]  ;;  %2695 = vmatprep.subr.msk.mxu0 %vm88_vm0, %v34_v0  ;;  %v41_v10 = vld [vmem:[%s3838_s2 + $0x10] sm:$0xff]  ;;  %vm2483_vm4 = vcmask 7168  }
   0x3   :  { %2703 = vmatprep.mubr.msk.f32.mxu1 %vm63_vm1, %v53_v1  ;;  %v39_v3 = vld [vmem:[%s3838_s2] sm:$0xff]  ;;  %3146 = vmatpush3.msk.msra.mxu1 %vm88_vm0, %v34_v0  ;;  %v50_v9 = vld [vmem:[%s3837_s0 + $0x8] sm:$0xff]  ;;  %v42_v11 = vld [vmem:[%s3838_s2 + $0x18] sm:$0xff] }
   0x4   :  { %v3356_v6 = vpack.c.bf16 %v40_v4, %v39_v3  ;;  %v49_v7 = vld [vmem:[%s3837_s0] sm:$0xff]  ;;  %2704 = vmatmul.mubr.msk.f32.vlgmr.msra.gmra.mrb[0].mxu1 %vm63_vm1, %v54_v2  ;;  %2993 = vmatprep.subr.bf16.mxu1 %v3280_v8  ;;  %v56_v12 = vld [vmem:[%s3837_s0 + $0x38] sm:$0xff]  ;;  %v3378_v13 = vpack.c.bf16 %v42_v11, %v41_v10  ;;  %v44_v38 = vld [vmem:[%s3840_s5 + $0x8] sm:$0xff] }
   0x5   :  { %2706 = vmatprep.mubr.msk.f32.mxu1 %vm63_vm1, %v55_v5  ;;  %2696 = vmatpush3.msk.msra.mxu0 %vm88_vm0, %v34_v0  ;;  %v3406_v18 = vld [vmem:[%s3839_s3] ss:$0 sm:$0xff]  ;;  %v51_v40 = vld [vmem:[%s3837_s0 + $0x10] sm:$0xff]  ;;  %v52_v41 = vld [vmem:[%s3837_s0 + $0x18] sm:$0xff]  ;;  %s3284_s0 = smov 64  }
   0x6   :  { %2995 = vmatpush3.bf16.msra.mxu1 %v3356_v6  ;;  %2697 = vmatprep.mubr.msk.f32.mxu0 %vm63_vm1, %v49_v7  ;;  %v43_v37 = vld [vmem:[%s3840_s5] sm:$0xff]  ;;  %v45_v42 = vld [vmem:[%s3840_s5 + $0x10] sm:$0xff]  ;;  %v46_v43 = vld [vmem:[%s3840_s5 + $0x18] sm:$0xff] }
   0x7   :  { %2996 = vmatprep.subr.bf16.mxu1 %v3280_v8  ;;  %2698 = vmatmul.mubr.msk.f32.vlgmr.msra.gmra.mrb[0].mxu0 %vm63_vm1, %v50_v9  ;;  %v3425_v39 = vpack.c.bf16 %v44_v38, %v43_v37  ;;  %v3443_v44 = vpack.c.bf16 %v46_v43, %v45_v42  ;;  %v35_v47 = vld [vmem:[%s3841_s4] sm:$0xff]  ;;  %v36_v48 = vld [vmem:[%s3841_s4 + $0x8] sm:$0xff]  ;;  %v37_v50 = vld [vmem:[%s3841_s4 + $0x10] sm:$0xff] }
   0x8   :  { %2707 = vmatmul.mubr.msk.f32.gmra.mrb[2].mxu1 %vm63_vm1, %v56_v12  ;;  %3005 = vmatprep.subr.bf16.mxu0 %v3280_v8  ;;  %v3463_v49 = vpack.c.bf16 %v36_v48, %v35_v47  ;;  %v38_v51 = vld [vmem:[%s3841_s4 + $0x18] sm:$0xff]  ;;  %v3496_v62 = vld [vmem:[%s3842_s6] ss:$0 sm:$0xff] }
   0x9   :  { %2717 = vmatprep.mubr.msk.f32.mxu1 %vm3281_vm2, %v3282_v14  ;;  %3007 = vmatpush3.bf16.msra.mxu0 %v3425_v39  ;;  %v3473_v53 = vpack.c.bf16 %v38_v51, %v37_v50 }
   0xa   :  { %2998 = vmatpush3.bf16.msra.mxu1 %v3378_v13  ;;  %3008 = vmatprep.subr.bf16.mxu0 %v3280_v8 }
   0xb   :  { %2999 = vmatprep.subr.bf16.mxu1 %v3280_v8  ;;  %2700 = vmatprep.mubr.msk.f32.mxu0 %vm63_vm1, %v51_v40 }
   0xc   :  { %2701 = vmatmul.mubr.msk.f32.gmra.mrb[2].mxu0 %vm63_vm1, %v52_v41 }
   0xd   :  { %2718 = vmatmul.mubr.f32.vlgmr.msra.gmra.mrb[4].mxu1 %v3282_v14  ;;  %2739 = vmatprep.mubr.msk.f32.mxu0 %vm3281_vm2, %v3282_v14 }
   0xe   :  { %3001 = vmatpush3.bf16.msra.mxu1 %v3356_v6  ;;  %2728 = vmatprep.mubr.msk.f32.mxu1 %vm3281_vm2, %v3282_v14 }
   0xf   :  { %3002 = vmatprep.subr.bf16.mxu1 %v3280_v8  ;;  %3010 = vmatpush3.bf16.msra.mxu0 %v3443_v44 }
  0x10   :  { %3017 = vmatprep.subr.bf16.mxu0 %v3280_v8 }
  0x12   :  { %3004 = vmatpush3.bf16.msra.mxu1 %v3378_v13  ;;  %2740 = vmatmul.mubr.f32.vlgmr.msra.gmra.mrb[4].mxu0 %v3282_v14 }
  0x13   :  { %3011 = vmatprep.subr.bf16.mxu1 %v3280_v8  ;;  %3019 = vmatpush3.bf16.msra.mxu0 %v3356_v6 }
  0x14   :  { %2761 = vmatprep.mubr.msk.f32.mxu0 %vm3281_vm2, %v3282_v14  ;;  %3020 = vmatprep.subr.bf16.mxu0 %v3280_v8 }
  0x17   :  { %3022 = vmatpush3.bf16.msra.mxu0 %v3378_v13 }
  0x18   :  { %3029 = vmatprep.subr.bf16.mxu0 %v3280_v8 }
  0xd7   :  { %v3397_v15 = vpop.f32.mrb[0].mxu1 }
  0xd8   :  { %v3399_v16 = vpop.f32.mrb[1].mxu1 }
  0xda   :  { %v3401_v17 = vpop.f32.mrb[0].mxu0 }
  0xdb   :  { %v3408_v19 = vpop.f32.mrb[2].mxu1  ;;  %v158_v20 = vpop.f32.mrb[1].mxu0  ;;  %v164_v58 = vadd.f32 %v3401_v17, %v3406_v18 }
  0xdc   :  { %v3410_v21 = vpop.f32.mrb[3].mxu1  ;;  %v159_v22 = vadd.f32 %v3406_v18, %v158_v20 }
  0xdf   :  { %v3487_v54 = vpop.f32.mrb[2].mxu0 }
  0xe0   :  { %v267_v23 = vpop.f32.mrb[4].mxu1  ;;  %v3489_v55 = vpop.f32.mrb[3].mxu0 }
  0xe1   :  { %v271_v24 = vadd.f32 %v267_v23, %v159_v22  ;;  %v2719_v25 = vpop.f32.mrb[5].mxu1  ;;  %v169_v41 = vadd.f32 %v3406_v18, %v3489_v55 }
  0xe3   :  { %3152 = vtanh.f32 %v271_v24  ;;  %v2506_v27 = vmul.f32 -1.442695, %v271_v24 }
  0xe5   :  { %3154 = vpow2.f32 %v2506_v27  ;;  %v462_v56 = vpop.f32.mrb[4].mxu0 }
  0xe6   :  { %v2741_v57 = vpop.f32.mrb[5].mxu0 }
  0xed   :  { %v3153_v26 = vpop.eup %3152 }
  0xee   :  { %281 = vrot.lane.b32.xlu0 %v3153_v26, %s3283_s10 }
  0xef   :  { %v3155_v28 = vpop.eup %3154 }
  0xf0   :  { %v275_v29 = vadd.f32 1.0, %v3155_v28 }
  0xf2   :  { %3156 = vrcp.f32 %v275_v29 }
  0xfc   :  { %v3157_v30 = vpop.eup %3156 }
  0xfd   :  { %v279_v33 = vmul.f32 0.0, %v3157_v30 }
 0x160   :  { %v282_v31 = vpop.permute.xlu0 %281 }
 0x161   :  { %v284_v32 = vmul.f32 %v3157_v30, %v282_v31 }
 0x163   :  { %286 = vrot.lane.b32.xlu0 %v284_v32, %s3283_s10 }
 0x1d5   :  { %v287_v34 = vpop.permute.xlu0 %286 }
 0x1d6   :  { %v3415_v35 = vadd.f32 %v287_v34, %v279_v33 }
 0x1d8   :  { %3158 = vtanh.f32 %v3415_v35 }
 0x1e2   :  { %v3159_v36 = vpop.eup %3158 }
 0x1e3   :  { %292 = vrot.lane.b32.xlu1 %v3159_v36, %s3283_s10 }
 0x255   :  { %v293_v45 = vpop.permute.xlu1 %292 }
 0x256   :  { %v295_v46 = vmul.f32 %v3157_v30, %v293_v45 }
 0x258   :  { %297 = vrot.lane.b32.xlu1 %v295_v46, %s3284_s0 }
 0x2ca   :  { %v298_v52 = vpop.permute.xlu1 %297 }
 0x2cb   :  { %2729 = vmatmul.mubr.msk.f32.vlgmr.msra.gmra.mrb[6].mxu1 %vm197_vm3, %v298_v52 }
 0x2cc   :  { %3013 = vmatpush3.bf16.msra.mxu1 %v3463_v49  ;;  %2750 = vmatprep.mubr.msk.f32.mxu1 %vm3281_vm2, %v3282_v14 }
 0x2cd   :  { %3014 = vmatprep.subr.bf16.mxu1 %v3280_v8 }
 0x2d0   :  { %3016 = vmatpush3.bf16.msra.mxu1 %v3473_v53 }
 0x2d1   :  { %3023 = vmatprep.subr.bf16.mxu1 %v3280_v8 }
 0x2d3   :  { %2751 = vmatmul.mubr.msk.f32.vlgmr.msra.gmra.mrb[8].mxu1 %vm197_vm3, %v298_v52 }
 0x2d4   :  { %3025 = vmatpush3.bf16.msra.mxu1 %v3425_v39  ;;  %2772 = vmatprep.mubr.msk.f32.mxu1 %vm3281_vm2, %v3282_v14 }
 0x2d5   :  { %3026 = vmatprep.subr.bf16.mxu1 %v3280_v8 }
 0x2d8   :  { %3028 = vmatpush3.bf16.msra.mxu1 %v3443_v44 }
 0x2d9   :  { %3035 = vmatprep.subr.bf16.mxu1 %v3280_v8 }
 0x39e   :  { %v367_v59 = vpop.f32.mrb[6].mxu1 }
 0x39f   :  { %v371_v60 = vadd.f32 %v367_v59, %v164_v58  ;;  %v2730_v61 = vpop.f32.mrb[7].mxu1 }
 0x3a1   :  { %3160 = vtanh.f32 %v371_v60  ;;  %v2508_v5 = vmul.f32 -1.442695, %v371_v60 }
 0x3a6   :  { %v532_v63 = vpop.f32.mrb[8].mxu1 }
 0x3a7   :  { %v533_v0 = vadd.f32 %v532_v63, %v462_v56  ;;  %v2752_v1 = vpop.f32.mrb[9].mxu1 }
 0x3a9   :  { %v542_v2 = vadd.f32 %v3496_v62, %v533_v0 }
 0x3ab   :  { %v3161_v3 = vpop.eup %3160  ;;  %3162 = vtanh.f32 %v542_v2  ;;  %v2511_v7 = vmul.f32 -1.442695, %v542_v2 }
 0x3ac   :  { %381 = vrot.lane.b32.xlu0 %v3161_v3, %s3283_s10  ;;  %3164 = vpow2.f32 %v2508_v5 }
 0x3ad   :  { %3166 = vpow2.f32 %v2511_v7 }
 0x3b5   :  { %v3163_v4 = vpop.eup %3162 }
 0x3b6   :  { %552 = vrot.lane.b32.xlu1 %v3163_v4, %s3283_s10  ;;  %v3165_v9 = vpop.eup %3164 }
 0x3b7   :  { %v375_v10 = vadd.f32 1.0, %v3165_v9  ;;  %v3167_v11 = vpop.eup %3166 }
 0x3b8   :  { %v546_v12 = vadd.f32 1.0, %v3167_v11 }
 0x3b9   :  { %3168 = vrcp.f32 %v375_v10 }
 0x3ba   :  { %3170 = vrcp.f32 %v546_v12 }
 0x3c3   :  { %v3169_v17 = vpop.eup %3168 }
 0x3c4   :  { %v3171_v23 = vpop.eup %3170  ;;  %v379_v26 = vmul.f32 %v3169_v17, %v3415_v35 }
 0x3c5   :  { %v550_v29 = vmul.f32 0.0, %v3171_v23 }
 0x41e   :  { %v382_v20 = vpop.permute.xlu0 %381 }
 0x41f   :  { %v384_v22 = vmul.f32 %v3169_v17, %v382_v20 }
 0x421   :  { %386 = vrot.lane.b32.xlu0 %v384_v22, %s3283_s10 }
 0x428   :  { %v553_v24 = vpop.permute.xlu1 %552 }
 0x429   :  { %v555_v25 = vmul.f32 %v3171_v23, %v553_v24 }
 0x42b   :  { %557 = vrot.lane.b32.xlu1 %v555_v25, %s3283_s10 }
 0x493   :  { %v387_v27 = vpop.permute.xlu0 %386 }
 0x494   :  { %v3504_v28 = vadd.f32 %v387_v27, %v379_v26 }
 0x496   :  { %3172 = vtanh.f32 %v3504_v28 }
 0x49d   :  { %v558_v30 = vpop.permute.xlu1 %557 }
 0x49e   :  { %v3507_v31 = vadd.f32 %v558_v30, %v550_v29  ;;  %v174_v29 = vadd.f32 %v3487_v54, %v3406_v18 }
 0x4a0   :  { %v3173_v32 = vpop.eup %3172  ;;  %3174 = vtanh.f32 %v3507_v31 }
 0x4a1   :  { %392 = vrot.lane.b32.xlu0 %v3173_v32, %s3283_s10 }
 0x4aa   :  { %v3175_v33 = vpop.eup %3174 }
 0x4ab   :  { %563 = vrot.lane.b32.xlu1 %v3175_v33, %s3283_s10 }
 0x513   :  { %v393_v34 = vpop.permute.xlu0 %392 }
 0x514   :  { %v395_v36 = vmul.f32 %v3169_v17, %v393_v34 }
 0x516   :  { %568 = vrot.lane.b32.xlu0 %v395_v36, %s3284_s0 }
 0x51d   :  { %v564_v35 = vpop.permute.xlu1 %563 }
 0x51e   :  { %v566_v37 = vmul.f32 %v3171_v23, %v564_v35 }
 0x520   :  { %668 = vrot.lane.b32.xlu1 %v566_v37, %s3284_s0 }
 0x588   :  { %v569_v38 = vpop.permute.xlu0 %568 }
 0x589   :  { %2762 = vmatmul.mubr.msk.f32.vlgmr.msra.gmra.mrb[6].mxu0 %vm197_vm3, %v569_v38 }
 0x58a   :  { %3031 = vmatpush3.bf16.msra.mxu0 %v3463_v49  ;;  %2783 = vmatprep.mubr.msk.f32.mxu0 %vm3281_vm2, %v3282_v14 }
 0x58b   :  { %3032 = vmatprep.subr.bf16.mxu0 %v3280_v8 }
 0x58e   :  { %3034 = vmatpush3.bf16.msra.mxu0 %v3473_v53 }
 0x58f   :  { %3041 = vmatprep.subr.bf16.mxu0 %v3280_v8 }
 0x591   :  { %2784 = vmatmul.mubr.msk.f32.vlgmr.msra.gmra.mrb[8].mxu0 %vm197_vm3, %v569_v38 }
 0x592   :  { %v3522_v40 = vpop.permute.xlu1 %668  ;;  %3043 = vmatpush3.bf16.msra.mxu0 %v3425_v39  ;;  %2805 = vmatprep.mubr.msk.f32.mxu0 %vm3281_vm2, %v3282_v14 }
 0x593   :  { %2773 = vmatmul.mubr.msk.f32.vlgmr.msra.gmra.mrb[10].mxu1 %vm197_vm3, %v3522_v40  ;;  %3044 = vmatprep.subr.bf16.mxu0 %v3280_v8 }
 0x594   :  { %3037 = vmatpush3.bf16.msra.mxu1 %v3356_v6  ;;  %2794 = vmatprep.mubr.msk.f32.mxu1 %vm3281_vm2, %v3282_v14 }
 0x595   :  { %3038 = vmatprep.subr.bf16.mxu1 %v3280_v8 }
 0x596   :  { %3046 = vmatpush3.bf16.msra.mxu0 %v3443_v44 }
 0x597   :  { %3053 = vmatprep.subr.bf16.mxu0 %v3280_v8 }
 0x598   :  { %3040 = vmatpush3.bf16.msra.mxu1 %v3378_v13 }
 0x599   :  { %3047 = vmatprep.subr.bf16.mxu1 %v3280_v8 }
 0x65c   :  { %v638_v42 = vpop.f32.mrb[6].mxu0 }
 0x65d   :  { %v642_v43 = vadd.f32 %v638_v42, %v169_v41  ;;  %v2763_v45 = vpop.f32.mrb[7].mxu0 }
 0x65f   :  { %3176 = vtanh.f32 %v642_v43  ;;  %v2513_v58 = vmul.f32 -1.442695, %v642_v43 }
 0x664   :  { %v808_v46 = vpop.f32.mrb[8].mxu0 }
 0x665   :  { %v2785_v47 = vpop.f32.mrb[9].mxu0 }
 0x666   :  { %v738_v48 = vpop.f32.mrb[10].mxu1 }
 0x667   :  { %v809_v50 = vadd.f32 %v808_v46, %v738_v48  ;;  %v2774_v51 = vpop.f32.mrb[11].mxu1 }
 0x669   :  { %v3177_v52 = vpop.eup %3176  ;;  %v812_v56 = vadd.f32 %v3496_v62, %v809_v50 }
 0x66a   :  { %652 = vrot.lane.b32.xlu0 %v3177_v52, %s3283_s10 }
 0x66b   :  { %3178 = vtanh.f32 %v812_v56  ;;  %v2516_v55 = vmul.f32 -1.442695, %v812_v56 }
 0x66c   :  { %3180 = vpow2.f32 %v2513_v58 }
 0x66d   :  { %3182 = vpow2.f32 %v2516_v55 }
 0x675   :  { %v3179_v57 = vpop.eup %3178 }
 0x676   :  { %822 = vrot.lane.b32.xlu1 %v3179_v57, %s3283_s10  ;;  %v3181_v59 = vpop.eup %3180 }
 0x677   :  { %v646_v60 = vadd.f32 1.0, %v3181_v59  ;;  %v3183_v61 = vpop.eup %3182 }
 0x678   :  { %v816_v63 = vadd.f32 1.0, %v3183_v61 }
 0x679   :  { %3184 = vrcp.f32 %v646_v60 }
 0x67a   :  { %3186 = vrcp.f32 %v816_v63 }
 0x683   :  { %v3185_v0 = vpop.eup %3184 }
 0x684   :  { %v3187_v3 = vpop.eup %3186  ;;  %v650_v7 = vmul.f32 %v3185_v0, %v3504_v28 }
 0x685   :  { %v820_v11 = vmul.f32 %v3187_v3, %v3507_v31 }
 0x6dc   :  { %v653_v1 = vpop.permute.xlu0 %652 }
 0x6dd   :  { %v655_v2 = vmul.f32 %v3185_v0, %v653_v1 }
 0x6df   :  { %657 = vrot.lane.b32.xlu0 %v655_v2, %s3283_s10 }
 0x6e8   :  { %v823_v4 = vpop.permute.xlu1 %822 }
 0x6e9   :  { %v825_v5 = vmul.f32 %v3187_v3, %v823_v4 }
 0x6eb   :  { %827 = vrot.lane.b32.xlu1 %v825_v5, %s3283_s10 }
 0x751   :  { %v658_v9 = vpop.permute.xlu0 %657 }
 0x752   :  { %v3546_v10 = vadd.f32 %v658_v9, %v650_v7 }
 0x754   :  { %3188 = vtanh.f32 %v3546_v10 }
 0x75d   :  { %v828_v12 = vpop.permute.xlu1 %827 }
 0x75e   :  { %v3189_v17 = vpop.eup %3188  ;;  %v3550_v20 = vadd.f32 %v828_v12, %v820_v11  ;;  %v179_v11 = vadd.f32 %v3406_v18, %v3399_v16 }
 0x75f   :  { %663 = vrot.lane.b32.xlu0 %v3189_v17, %s3283_s10 }
 0x760   :  { %3190 = vtanh.f32 %v3550_v20 }
 0x76a   :  { %v3191_v22 = vpop.eup %3190 }
 0x76b   :  { %833 = vrot.lane.b32.xlu1 %v3191_v22, %s3283_s10 }
 0x7d1   :  { %v664_v23 = vpop.permute.xlu0 %663 }
 0x7d2   :  { %v666_v24 = vmul.f32 %v3185_v0, %v664_v23 }
 0x7d4   :  { %838 = vrot.lane.b32.xlu0 %v666_v24, %s3284_s0 }
 0x7dd   :  { %v834_v25 = vpop.permute.xlu1 %833 }
 0x7de   :  { %v836_v26 = vmul.f32 %v3187_v3, %v834_v25 }
 0x7e0   :  { %938 = vrot.lane.b32.xlu1 %v836_v26, %s3284_s0 }
 0x846   :  { %v839_v27 = vpop.permute.xlu0 %838 }
 0x847   :  { %2795 = vmatmul.mubr.msk.f32.vlgmr.msra.gmra.mrb[12].mxu1 %vm197_vm3, %v839_v27 }
 0x848   :  { %3049 = vmatpush3.bf16.msra.mxu1 %v3463_v49  ;;  %2816 = vmatprep.mubr.msk.f32.mxu1 %vm3281_vm2, %v3282_v14 }
 0x849   :  { %3050 = vmatprep.subr.bf16.mxu1 %v3280_v8 }
 0x84c   :  { %3052 = vmatpush3.bf16.msra.mxu1 %v3473_v53 }
 0x84d   :  { %3059 = vmatprep.subr.bf16.mxu1 %v3280_v8 }
 0x84f   :  { %2817 = vmatmul.mubr.msk.f32.vlgmr.msra.gmra.mrb[14].mxu1 %vm197_vm3, %v839_v27 }
 0x850   :  { %3061 = vmatpush3.bf16.msra.mxu1 %v3425_v39  ;;  %2838 = vmatprep.mubr.msk.f32.mxu1 %vm3281_vm2, %v3282_v14 }
 0x851   :  { %3062 = vmatprep.subr.bf16.mxu1 %v3280_v8 }
 0x852   :  { %v3569_v28 = vpop.permute.xlu1 %938 }
 0x853   :  { %2806 = vmatmul.mubr.msk.f32.vlgmr.msra.gmra.mrb[10].mxu0 %vm197_vm3, %v3569_v28 }
 0x854   :  { %3055 = vmatpush3.bf16.msra.mxu0 %v3356_v6  ;;  %2827 = vmatprep.mubr.msk.f32.mxu0 %vm3281_vm2, %v3282_v14 }
 0x855   :  { %3056 = vmatprep.subr.bf16.mxu0 %v3280_v8  ;;  %3064 = vmatpush3.bf16.msra.mxu1 %v3443_v44 }
 0x856   :  { %3071 = vmatprep.subr.bf16.mxu1 %v3280_v8 }
 0x858   :  { %3058 = vmatpush3.bf16.msra.mxu0 %v3378_v13 }
 0x859   :  { %3065 = vmatprep.subr.bf16.mxu0 %v3280_v8 }
 0x91a   :  { %v908_v30 = vpop.f32.mrb[12].mxu1 }
 0x91b   :  { %v912_v31 = vadd.f32 %v908_v30, %v174_v29  ;;  %v2796_v32 = vpop.f32.mrb[13].mxu1 }
 0x91d   :  { %3192 = vtanh.f32 %v912_v31  ;;  %v2518_v43 = vmul.f32 -1.442695, %v912_v31 }
 0x922   :  { %v1078_v33 = vpop.f32.mrb[14].mxu1 }
 0x923   :  { %v2818_v34 = vpop.f32.mrb[15].mxu1 }
 0x926   :  { %v1008_v36 = vpop.f32.mrb[10].mxu0 }
 0x927   :  { %v3193_v35 = vpop.eup %3192  ;;  %v1079_v37 = vadd.f32 %v1078_v33, %v1008_v36  ;;  %v2807_v38 = vpop.f32.mrb[11].mxu0 }
 0x928   :  { %922 = vrot.lane.b32.xlu0 %v3193_v35, %s3283_s10 }
 0x929   :  { %v1082_v41 = vadd.f32 %v3496_v62, %v1079_v37 }
 0x92b   :  { %3194 = vtanh.f32 %v1082_v41  ;;  %v2521_v45 = vmul.f32 -1.442695, %v1082_v41 }
 0x92c   :  { %3196 = vpow2.f32 %v2518_v43 }
 0x92d   :  { %3198 = vpow2.f32 %v2521_v45 }
 0x935   :  { %v3195_v42 = vpop.eup %3194 }
 0x936   :  { %1092 = vrot.lane.b32.xlu1 %v3195_v42, %s3283_s10  ;;  %v3197_v54 = vpop.eup %3196 }
 0x937   :  { %v916_v46 = vadd.f32 1.0, %v3197_v54  ;;  %v3199_v47 = vpop.eup %3198 }
 0x938   :  { %v1086_v50 = vadd.f32 1.0, %v3199_v47 }
 0x939   :  { %3200 = vrcp.f32 %v916_v46 }
 0x93a   :  { %3202 = vrcp.f32 %v1086_v50 }
 0x943   :  { %v3201_v48 = vpop.eup %3200 }
 0x944   :  { %v3203_v56 = vpop.eup %3202  ;;  %v920_v55 = vmul.f32 %v3201_v48, %v3546_v10 }
 0x945   :  { %v1090_v63 = vmul.f32 %v3203_v56, %v3550_v20 }
 0x99a   :  { %v923_v51 = vpop.permute.xlu0 %922 }
 0x99b   :  { %v925_v52 = vmul.f32 %v3201_v48, %v923_v51 }
 0x99d   :  { %927 = vrot.lane.b32.xlu0 %v925_v52, %s3283_s10 }
 0x9a8   :  { %v1093_v57 = vpop.permute.xlu1 %1092 }
 0x9a9   :  { %v1095_v58 = vmul.f32 %v3203_v56, %v1093_v57 }
 0x9ab   :  { %1097 = vrot.lane.b32.xlu1 %v1095_v58, %s3283_s10 }
 0xa0f   :  { %v928_v59 = vpop.permute.xlu0 %927 }
 0xa10   :  { %v3589_v60 = vadd.f32 %v928_v59, %v920_v55 }
 0xa12   :  { %3204 = vtanh.f32 %v3589_v60 }
 0xa1c   :  { %v3205_v61 = vpop.eup %3204 }
 0xa1d   :  { %v1098_v0 = vpop.permute.xlu1 %1097  ;;  %933 = vrot.lane.b32.xlu0 %v3205_v61, %s3283_s10  ;;  %v184_v61 = vadd.f32 %v3397_v15, %v3406_v18 }
 0xa1e   :  { %v3594_v1 = vadd.f32 %v1098_v0, %v1090_v63 }
 0xa20   :  { %3206 = vtanh.f32 %v3594_v1 }
 0xa2a   :  { %v3207_v2 = vpop.eup %3206 }
 0xa2b   :  { %1103 = vrot.lane.b32.xlu1 %v3207_v2, %s3283_s10 }
 0xa8f   :  { %v934_v3 = vpop.permute.xlu0 %933 }
 0xa90   :  { %v936_v4 = vmul.f32 %v3201_v48, %v934_v3 }
 0xa92   :  { %1108 = vrot.lane.b32.xlu0 %v936_v4, %s3284_s0 }
 0xa9d   :  { %v1104_v5 = vpop.permute.xlu1 %1103 }
 0xa9e   :  { %v1106_v7 = vmul.f32 %v3203_v56, %v1104_v5 }
 0xaa0   :  { %1208 = vrot.lane.b32.xlu1 %v1106_v7, %s3284_s0 }
 0xb04   :  { %v1109_v9 = vpop.permute.xlu0 %1108 }
 0xb05   :  { %2828 = vmatmul.mubr.msk.f32.vlgmr.msra.gmra.mrb[12].mxu0 %vm197_vm3, %v1109_v9 }
 0xb06   :  { %3067 = vmatpush3.bf16.msra.mxu0 %v3463_v49  ;;  %2849 = vmatprep.mubr.msk.f32.mxu0 %vm3281_vm2, %v3282_v14 }
 0xb07   :  { %3068 = vmatprep.subr.bf16.mxu0 %v3280_v8 }
 0xb0a   :  { %3070 = vmatpush3.bf16.msra.mxu0 %v3473_v53 }
 0xb0b   :  { %3077 = vmatprep.subr.bf16.mxu0 %v3280_v8 }
 0xb0d   :  { %2850 = vmatmul.mubr.msk.f32.vlgmr.msra.gmra.mrb[14].mxu0 %vm197_vm3, %v1109_v9 }
 0xb0e   :  { %3079 = vmatpush3.bf16.msra.mxu0 %v3425_v39  ;;  %2871 = vmatprep.mubr.msk.f32.mxu0 %vm3281_vm2, %v3282_v14 }
 0xb0f   :  { %3080 = vmatprep.subr.bf16.mxu0 %v3280_v8 }
 0xb12   :  { %v3612_v10 = vpop.permute.xlu1 %1208  ;;  %3082 = vmatpush3.bf16.msra.mxu0 %v3443_v44 }
 0xb13   :  { %2839 = vmatmul.mubr.msk.f32.vlgmr.msra.gmra.mrb[16].mxu1 %vm197_vm3, %v3612_v10  ;;  %3089 = vmatprep.subr.bf16.mxu0 %v3280_v8 }
 0xb14   :  { %3073 = vmatpush3.bf16.msra.mxu1 %v3356_v6  ;;  %2860 = vmatprep.mubr.msk.f32.mxu1 %vm3281_vm2, %v3282_v14 }
 0xb15   :  { %3074 = vmatprep.subr.bf16.mxu1 %v3280_v8 }
 0xb18   :  { %3076 = vmatpush3.bf16.msra.mxu1 %v3378_v13 }
 0xb19   :  { %3083 = vmatprep.subr.bf16.mxu1 %v3280_v8 }
 0xbd8   :  { %v1178_v12 = vpop.f32.mrb[12].mxu0 }
 0xbd9   :  { %v1182_v17 = vadd.f32 %v1178_v12, %v179_v11  ;;  %v2829_v20 = vpop.f32.mrb[13].mxu0 }
 0xbdb   :  { %3208 = vtanh.f32 %v1182_v17  ;;  %v2523_v31 = vmul.f32 -1.442695, %v1182_v17 }
 0xbe0   :  { %v1348_v22 = vpop.f32.mrb[14].mxu0 }
 0xbe1   :  { %v2851_v23 = vpop.f32.mrb[15].mxu0 }
 0xbe5   :  { %v3209_v24 = vpop.eup %3208 }
 0xbe6   :  { %v1278_v25 = vpop.f32.mrb[16].mxu1  ;;  %1192 = vrot.lane.b32.xlu0 %v3209_v24, %s3283_s10 }
 0xbe7   :  { %v1349_v26 = vadd.f32 %v1348_v22, %v1278_v25  ;;  %v2840_v27 = vpop.f32.mrb[17].mxu1 }
 0xbe9   :  { %v1352_v29 = vadd.f32 %v3496_v62, %v1349_v26 }
 0xbeb   :  { %3210 = vtanh.f32 %v1352_v29  ;;  %v2526_v32 = vmul.f32 -1.442695, %v1352_v29 }
 0xbec   :  { %3212 = vpow2.f32 %v2523_v31 }
 0xbed   :  { %3214 = vpow2.f32 %v2526_v32 }
 0xbf5   :  { %v3211_v30 = vpop.eup %3210 }
 0xbf6   :  { %1362 = vrot.lane.b32.xlu1 %v3211_v30, %s3283_s10  ;;  %v3213_v16 = vpop.eup %3212 }
 0xbf7   :  { %v1186_v33 = vadd.f32 1.0, %v3213_v16  ;;  %v3215_v34 = vpop.eup %3214 }
 0xbf8   :  { %v1356_v38 = vadd.f32 1.0, %v3215_v34 }
 0xbf9   :  { %3216 = vrcp.f32 %v1186_v33 }
 0xbfa   :  { %3218 = vrcp.f32 %v1356_v38 }
 0xc03   :  { %v3217_v36 = vpop.eup %3216 }
 0xc04   :  { %v3219_v41 = vpop.eup %3218  ;;  %v1190_v54 = vmul.f32 %v3217_v36, %v3589_v60 }
 0xc05   :  { %v1360_v48 = vmul.f32 %v3219_v41, %v3594_v1 }
 0xc58   :  { %v1193_v35 = vpop.permute.xlu0 %1192 }
 0xc59   :  { %v1195_v37 = vmul.f32 %v3217_v36, %v1193_v35 }
 0xc5b   :  { %1197 = vrot.lane.b32.xlu0 %v1195_v37, %s3283_s10 }
 0xc68   :  { %v1363_v42 = vpop.permute.xlu1 %1362 }
 0xc69   :  { %v1365_v43 = vmul.f32 %v3219_v41, %v1363_v42 }
 0xc6b   :  { %1367 = vrot.lane.b32.xlu1 %v1365_v43, %s3283_s10 }
 0xccd   :  { %v1198_v45 = vpop.permute.xlu0 %1197 }
 0xcce   :  { %v3632_v46 = vadd.f32 %v1198_v45, %v1190_v54 }
 0xcd0   :  { %3220 = vtanh.f32 %v3632_v46 }
 0xcda   :  { %v3221_v47 = vpop.eup %3220 }
 0xcdb   :  { %1203 = vrot.lane.b32.xlu0 %v3221_v47, %s3283_s10  ;;  %v189_v47 = vadd.f32 %v3406_v18, %v3410_v21 }
 0xcdd   :  { %v1368_v50 = vpop.permute.xlu1 %1367 }
 0xcde   :  { %v3637_v51 = vadd.f32 %v1368_v50, %v1360_v48 }
 0xce0   :  { %3222 = vtanh.f32 %v3637_v51 }
 0xcea   :  { %v3223_v52 = vpop.eup %3222 }
 0xceb   :  { %1373 = vrot.lane.b32.xlu1 %v3223_v52, %s3283_s10 }
 0xd4d   :  { %v1204_v56 = vpop.permute.xlu0 %1203 }
 0xd4e   :  { %v1206_v57 = vmul.f32 %v3217_v36, %v1204_v56 }
 0xd50   :  { %1378 = vrot.lane.b32.xlu0 %v1206_v57, %s3284_s0 }
 0xd5d   :  { %v1374_v58 = vpop.permute.xlu1 %1373 }
 0xd5e   :  { %v1376_v55 = vmul.f32 %v3219_v41, %v1374_v58 }
 0xd60   :  { %1478 = vrot.lane.b32.xlu1 %v1376_v55, %s3284_s0 }
 0xdc2   :  { %v1379_v59 = vpop.permute.xlu0 %1378 }
 0xdc3   :  { %2861 = vmatmul.mubr.msk.f32.vlgmr.msra.gmra.mrb[18].mxu1 %vm197_vm3, %v1379_v59 }
 0xdc4   :  { %3085 = vmatpush3.bf16.msra.mxu1 %v3463_v49  ;;  %2882 = vmatprep.mubr.msk.f32.mxu1 %vm3281_vm2, %v3282_v14 }
 0xdc5   :  { %3086 = vmatprep.subr.bf16.mxu1 %v3280_v8 }
 0xdc8   :  { %3088 = vmatpush3.bf16.msra.mxu1 %v3473_v53 }
 0xdc9   :  { %3095 = vmatprep.subr.bf16.mxu1 %v3280_v8 }
 0xdcb   :  { %2883 = vmatmul.mubr.msk.f32.vlgmr.msra.gmra.mrb[20].mxu1 %vm197_vm3, %v1379_v59 }
 0xdcc   :  { %3097 = vmatpush3.bf16.msra.mxu1 %v3425_v39  ;;  %2904 = vmatprep.mubr.msk.f32.mxu1 %vm3281_vm2, %v3282_v14 }
 0xdcd   :  { %3098 = vmatprep.subr.bf16.mxu1 %v3280_v8 }
 0xdd0   :  { %3100 = vmatpush3.bf16.msra.mxu1 %v3443_v44 }
 0xdd1   :  { %3107 = vmatprep.subr.bf16.mxu1 %v3280_v8 }
 0xdd2   :  { %v3657_v60 = vpop.permute.xlu1 %1478 }
 0xdd3   :  { %2872 = vmatmul.mubr.msk.f32.vlgmr.msra.gmra.mrb[16].mxu0 %vm197_vm3, %v3657_v60 }
 0xdd4   :  { %3091 = vmatpush3.bf16.msra.mxu0 %v3356_v6  ;;  %2893 = vmatprep.mubr.msk.f32.mxu0 %vm3281_vm2, %v3282_v14 }
 0xdd5   :  { %3092 = vmatprep.subr.bf16.mxu0 %v3280_v8 }
 0xdd8   :  { %3094 = vmatpush3.bf16.msra.mxu0 %v3378_v13 }
 0xdd9   :  { %3101 = vmatprep.subr.bf16.mxu0 %v3280_v8 }
 0xe96   :  { %v1448_v63 = vpop.f32.mrb[18].mxu1 }
 0xe97   :  { %v1452_v0 = vadd.f32 %v1448_v63, %v184_v61  ;;  %v2862_v1 = vpop.f32.mrb[19].mxu1 }
 0xe99   :  { %3224 = vtanh.f32 %v1452_v0  ;;  %v2528_v17 = vmul.f32 -1.442695, %v1452_v0 }
 0xe9e   :  { %v1618_v2 = vpop.f32.mrb[20].mxu1 }
 0xe9f   :  { %v2884_v3 = vpop.f32.mrb[21].mxu1 }
 0xea3   :  { %v3225_v4 = vpop.eup %3224 }
 0xea4   :  { %1462 = vrot.lane.b32.xlu0 %v3225_v4, %s3283_s10 }
 0xea6   :  { %v1548_v5 = vpop.f32.mrb[16].mxu0 }
 0xea7   :  { %v1619_v7 = vadd.f32 %v1618_v2, %v1548_v5  ;;  %v2873_v9 = vpop.f32.mrb[17].mxu0 }
 0xea9   :  { %v1622_v11 = vadd.f32 %v3496_v62, %v1619_v7 }
 0xeab   :  { %3226 = vtanh.f32 %v1622_v11  ;;  %v2531_v22 = vmul.f32 -1.442695, %v1622_v11 }
 0xeac   :  { %3228 = vpow2.f32 %v2528_v17 }
 0xeb5   :  { %v3227_v12 = vpop.eup %3226 }
 0xeb6   :  { %1632 = vrot.lane.b32.xlu1 %v3227_v12, %s3283_s10  ;;  %v3229_v15 = vpop.eup %3228 }
 0xeb7   :  { %v1456_v20 = vadd.f32 1.0, %v3229_v15 }
 0xeb9   :  { %3230 = vrcp.f32 %v1456_v20 }
 0xeba   :  { %3232 = vpow2.f32 %v2531_v22 }
 0xec3   :  { %v3231_v23 = vpop.eup %3230 }
 0xec4   :  { %v3233_v25 = vpop.eup %3232  ;;  %v1460_v16 = vmul.f32 %v3231_v23, %v3632_v46 }
 0xec5   :  { %v1626_v27 = vadd.f32 1.0, %v3233_v25 }
 0xec7   :  { %3234 = vrcp.f32 %v1626_v27 }
 0xed1   :  { %v3235_v29 = vpop.eup %3234 }
 0xed2   :  { %v1630_v36 = vmul.f32 %v3235_v29, %v3637_v51 }
 0xf16   :  { %v1463_v24 = vpop.permute.xlu0 %1462 }
 0xf17   :  { %v1465_v26 = vmul.f32 %v3231_v23, %v1463_v24 }
 0xf19   :  { %1467 = vrot.lane.b32.xlu0 %v1465_v26, %s3283_s10 }
 0xf28   :  { %v1633_v30 = vpop.permute.xlu1 %1632 }
 0xf29   :  { %v1635_v31 = vmul.f32 %v3235_v29, %v1633_v30 }
 0xf2b   :  { %1637 = vrot.lane.b32.xlu1 %v1635_v31, %s3283_s10 }
 0xf8b   :  { %v1468_v32 = vpop.permute.xlu0 %1467 }
 0xf8c   :  { %v3675_v33 = vadd.f32 %v1468_v32, %v1460_v16 }
 0xf8e   :  { %3236 = vtanh.f32 %v3675_v33 }
 0xf98   :  { %v3237_v34 = vpop.eup %3236 }
 0xf99   :  { %1473 = vrot.lane.b32.xlu0 %v3237_v34, %s3283_s10 }
 0xf9d   :  { %v1638_v35 = vpop.permute.xlu1 %1637 }
 0xf9e   :  { %v3680_v37 = vadd.f32 %v1638_v35, %v1630_v36 }
 0xfa0   :  { %3238 = vtanh.f32 %v3680_v37 }
 0xfaa   :  { %v3239_v38 = vpop.eup %3238 }
 0xfab   :  { %1643 = vrot.lane.b32.xlu1 %v3239_v38, %s3283_s10 }
0x100b   :  { %v1474_v41 = vpop.permute.xlu0 %1473 }
0x100c   :  { %v1476_v42 = vmul.f32 %v3231_v23, %v1474_v41 }
0x100e   :  { %1648 = vrot.lane.b32.xlu0 %v1476_v42, %s3284_s0 }
0x101d   :  { %v1644_v43 = vpop.permute.xlu1 %1643 }
0x101e   :  { %v1646_v54 = vmul.f32 %v3235_v29, %v1644_v43 }
0x1020   :  { %1748 = vrot.lane.b32.xlu1 %v1646_v54, %s3284_s0 }
0x1080   :  { %v1649_v45 = vpop.permute.xlu0 %1648 }
0x1081   :  { %2894 = vmatmul.mubr.msk.f32.vlgmr.msra.gmra.mrb[18].mxu0 %vm197_vm3, %v1649_v45 }
0x1082   :  { %3103 = vmatpush3.bf16.msra.mxu0 %v3463_v49  ;;  %2915 = vmatprep.mubr.msk.f32.mxu0 %vm3281_vm2, %v3282_v14 }
0x1083   :  { %3104 = vmatprep.subr.bf16.mxu0 %v3280_v8 }
0x1086   :  { %3106 = vmatpush3.bf16.msra.mxu0 %v3473_v53 }
0x1087   :  { %3113 = vmatprep.subr.bf16.mxu0 %v3280_v8 }
0x1089   :  { %2916 = vmatmul.mubr.msk.f32.vlgmr.msra.gmra.mrb[20].mxu0 %vm197_vm3, %v1649_v45 }
0x108a   :  { %3115 = vmatpush3.bf16.msra.mxu0 %v3425_v39  ;;  %2937 = vmatprep.mubr.msk.f32.mxu0 %vm3281_vm2, %v3282_v14 }
0x108b   :  { %3116 = vmatprep.subr.bf16.mxu0 %v3280_v8 }
0x108e   :  { %3118 = vmatpush3.bf16.msra.mxu0 %v3443_v44 }
0x108f   :  { %3125 = vmatprep.subr.bf16.mxu0 %v3280_v8 }
0x1092   :  { %v3700_v46 = vpop.permute.xlu1 %1748 }
0x1093   :  { %2905 = vmatmul.mubr.msk.f32.vlgmr.msra.gmra.mrb[22].mxu1 %vm197_vm3, %v3700_v46 }
0x1094   :  { %3109 = vmatpush3.bf16.msra.mxu1 %v3356_v6  ;;  %2926 = vmatprep.mubr.msk.f32.mxu1 %vm3281_vm2, %v3282_v14 }
0x1095   :  { %3110 = vmatprep.subr.bf16.mxu1 %v3280_v8 }
0x1098   :  { %3112 = vmatpush3.bf16.msra.mxu1 %v3378_v13 }
0x1099   :  { %3119 = vmatprep.subr.bf16.mxu1 %v3280_v8 }
0x1154   :  { %v1718_v48 = vpop.f32.mrb[18].mxu0 }
0x1155   :  { %v1722_v50 = vadd.f32 %v1718_v48, %v189_v47  ;;  %v2895_v51 = vpop.f32.mrb[19].mxu0 }
0x1157   :  { %3240 = vtanh.f32 %v1722_v50  ;;  %v2533_v61 = vmul.f32 -1.442695, %v1722_v50 }
0x115c   :  { %v1888_v52 = vpop.f32.mrb[20].mxu0 }
0x115d   :  { %v2917_v56 = vpop.f32.mrb[21].mxu0 }
0x1161   :  { %v3241_v57 = vpop.eup %3240 }
0x1162   :  { %1732 = vrot.lane.b32.xlu0 %v3241_v57, %s3283_s10 }
0x1166   :  { %v1818_v6 = vpop.f32.mrb[22].mxu1 }
0x1167   :  { %v1889_v58 = vadd.f32 %v1888_v52, %v1818_v6  ;;  %v2906_v55 = vpop.f32.mrb[23].mxu1 }
0x1169   :  { %v1892_v59 = vadd.f32 %v3496_v62, %v1889_v58 }
0x116b   :  { %3242 = vtanh.f32 %v1892_v59  ;;  %v2536_v0 = vmul.f32 -1.442695, %v1892_v59 }
0x116c   :  { %3244 = vpow2.f32 %v2533_v61  ;;  %v2362_v61 = vld [vmem:[%s3843_s7] sm:$0xff] }
0x1175   :  { %v3243_v13 = vpop.eup %3242 }
0x1176   :  { %1902 = vrot.lane.b32.xlu1 %v3243_v13, %s3283_s10  ;;  %v3245_v21 = vpop.eup %3244 }
0x1177   :  { %v1726_v63 = vadd.f32 1.0, %v3245_v21  ;;  %v2363_v21 = vld [vmem:[%s3843_s7 + $0x8] sm:$0xff] }
0x1179   :  { %3246 = vrcp.f32 %v1726_v63  ;;  %v3137_v63 = vpack.c.bf16 %v2363_v21, %v2362_v61 }
0x117a   :  { %3248 = vpow2.f32 %v2536_v0 }
0x1183   :  { %v3247_v1 = vpop.eup %3246 }
0x1184   :  { %v3249_v4 = vpop.eup %3248  ;;  %v1730_v12 = vmul.f32 %v3247_v1, %v3675_v33 }
0x1185   :  { %v1896_v5 = vadd.f32 1.0, %v3249_v4 }
0x1187   :  { %3250 = vrcp.f32 %v1896_v5  ;;  %v2364_v5 = vld [vmem:[%s3843_s7 + $0x10] sm:$0xff] }
0x1191   :  { %v3251_v7 = vpop.eup %3250 }
0x1192   :  { %v1900_v22 = vmul.f32 %v3251_v7, %v3680_v37 }
0x11d4   :  { %v1733_v2 = vpop.permute.xlu0 %1732 }
0x11d5   :  { %v1735_v3 = vmul.f32 %v3247_v1, %v1733_v2 }
0x11d7   :  { %1737 = vrot.lane.b32.xlu0 %v1735_v3, %s3283_s10 }
0x11e8   :  { %v1903_v9 = vpop.permute.xlu1 %1902 }
0x11e9   :  { %v1905_v11 = vmul.f32 %v3251_v7, %v1903_v9 }
0x11eb   :  { %1907 = vrot.lane.b32.xlu1 %v1905_v11, %s3283_s10 }
0x1249   :  { %v1738_v17 = vpop.permute.xlu0 %1737 }
0x124a   :  { %v3718_v15 = vadd.f32 %v1738_v17, %v1730_v12 }
0x124c   :  { %3252 = vtanh.f32 %v3718_v15 }
0x1256   :  { %v3253_v20 = vpop.eup %3252 }
0x1257   :  { %1743 = vrot.lane.b32.xlu0 %v3253_v20, %s3283_s10 }
0x125d   :  { %v1908_v23 = vpop.permute.xlu1 %1907 }
0x125e   :  { %v3723_v24 = vadd.f32 %v1908_v23, %v1900_v22 }
0x1260   :  { %3254 = vtanh.f32 %v3723_v24 }
0x126a   :  { %v3255_v25 = vpop.eup %3254 }
0x126b   :  { %1913 = vrot.lane.b32.xlu1 %v3255_v25, %s3283_s10 }
0x12c9   :  { %v1744_v26 = vpop.permute.xlu0 %1743 }
0x12ca   :  { %v1746_v27 = vmul.f32 %v3247_v1, %v1744_v26 }
0x12cc   :  { %1918 = vrot.lane.b32.xlu0 %v1746_v27, %s3284_s0 }
0x12dd   :  { %v1914_v29 = vpop.permute.xlu1 %1913 }
0x12de   :  { %v1916_v30 = vmul.f32 %v3251_v7, %v1914_v29  ;;  %v2365_v7 = vld [vmem:[%s3843_s7 + $0x18] sm:$0xff] }
0x12df   :  { %v3141_v9 = vpack.c.bf16 %v2365_v7, %v2364_v5 }
0x12e0   :  { %2018 = vrot.lane.b32.xlu1 %v1916_v30, %s3284_s0 }
0x133e   :  { %v1919_v31 = vpop.permute.xlu0 %1918 }
0x133f   :  { %2927 = vmatmul.mubr.msk.f32.vlgmr.msra.gmra.mrb[24].mxu1 %vm197_vm3, %v1919_v31 }
0x1340   :  { %3121 = vmatpush3.bf16.msra.mxu1 %v3463_v49  ;;  %2948 = vmatprep.mubr.msk.f32.mxu1 %vm3281_vm2, %v3282_v14 }
0x1341   :  { %3122 = vmatprep.subr.bf16.mxu1 %v3280_v8 }
0x1344   :  { %3124 = vmatpush3.bf16.msra.mxu1 %v3473_v53 }
0x1345   :  { %3131 = vmatprep.subr.bf16.mxu1 %v3280_v8 }
0x1347   :  { %2949 = vmatmul.mubr.msk.f32.vlgmr.msra.gmra.mrb[26].mxu1 %vm197_vm3, %v1919_v31 }
0x1348   :  { %3133 = vmatpush3.bf16.msra.mxu1 %v3463_v49  ;;  %2970 = vmatprep.mubr.msk.f32.mxu1 %vm3281_vm2, %v3282_v14  ;;  %v194_v49 = vadd.f32 %v3408_v19, %v3406_v18 }
0x1349   :  { %3134 = vmatprep.subr.bf16.mxu1 %v3280_v8 }
0x134c   :  { %3136 = vmatpush3.bf16.msra.mxu1 %v3473_v53 }
0x1352   :  { %v3742_v16 = vpop.permute.xlu1 %2018 }
0x1353   :  { %2938 = vmatmul.mubr.msk.f32.vlgmr.msra.gmra.mrb[22].mxu0 %vm197_vm3, %v3742_v16 }
0x1354   :  { %3127 = vmatpush3.bf16.msra.mxu0 %v3425_v39  ;;  %2959 = vmatprep.mubr.msk.f32.mxu0 %vm3281_vm2, %v3282_v14 }
0x1355   :  { %3128 = vmatprep.subr.bf16.mxu0 %v3280_v8 }
0x1358   :  { %3130 = vmatpush3.bf16.msra.mxu0 %v3443_v44 }
0x1359   :  { %3138 = vmatprep.subr.bf16.mxu0 %v3137_v63 }
0x1412   :  { %v1988_v32 = vpop.f32.mrb[24].mxu1 }
0x1413   :  { %v1992_v33 = vadd.f32 %v1988_v32, %v194_v49  ;;  %v2928_v53 = vpop.f32.mrb[25].mxu1 }
0x1415   :  { %3256 = vtanh.f32 %v1992_v33  ;;  %v2538_v44 = vmul.f32 -1.442695, %v1992_v33 }
0x141a   :  { %v2158_v34 = vpop.f32.mrb[26].mxu1 }
0x141b   :  { %v2950_v36 = vpop.f32.mrb[27].mxu1 }
0x141f   :  { %v3257_v35 = vpop.eup %3256 }
0x1420   :  { %2002 = vrot.lane.b32.xlu0 %v3257_v35, %s3283_s10 }
0x1426   :  { %v2088_v39 = vpop.f32.mrb[22].mxu0 }
0x1427   :  { %v2159_v37 = vadd.f32 %v2158_v34, %v2088_v39  ;;  %v2939_v38 = vpop.f32.mrb[23].mxu0 }
0x1429   :  { %v2162_v14 = vadd.f32 %v3496_v62, %v2159_v37 }
0x142b   :  { %3258 = vtanh.f32 %v2162_v14  ;;  %v2541_v41 = vmul.f32 -1.442695, %v2162_v14 }
0x142c   :  { %3260 = vpow2.f32 %v2538_v44 }
0x1435   :  { %v3259_v8 = vpop.eup %3258 }
0x1436   :  { %2172 = vrot.lane.b32.xlu1 %v3259_v8, %s3283_s10  ;;  %v3261_v18 = vpop.eup %3260 }
0x1437   :  { %v1996_v19 = vadd.f32 1.0, %v3261_v18 }
0x1439   :  { %3262 = vrcp.f32 %v1996_v19 }
0x143a   :  { %3264 = vpow2.f32 %v2541_v41 }
0x1443   :  { %v3263_v42 = vpop.eup %3262 }
0x1444   :  { %v3265_v45 = vpop.eup %3264  ;;  %v2000_v52 = vmul.f32 %v3263_v42, %v3718_v15 }
0x1445   :  { %v2166_v47 = vadd.f32 1.0, %v3265_v45 }
0x1447   :  { %3266 = vrcp.f32 %v2166_v47 }
0x1451   :  { %v3267_v48 = vpop.eup %3266 }
0x1452   :  { %v2170_v58 = vmul.f32 %v3267_v48, %v3723_v24 }
0x1492   :  { %v2003_v43 = vpop.permute.xlu0 %2002 }
0x1493   :  { %v2005_v54 = vmul.f32 %v3263_v42, %v2003_v43 }
0x1495   :  { %2007 = vrot.lane.b32.xlu0 %v2005_v54, %s3283_s10 }
0x14a8   :  { %v2173_v50 = vpop.permute.xlu1 %2172 }
0x14a9   :  { %v2175_v51 = vmul.f32 %v3267_v48, %v2173_v50 }
0x14ab   :  { %2177 = vrot.lane.b32.xlu1 %v2175_v51, %s3283_s10 }
0x1507   :  { %v2008_v56 = vpop.permute.xlu0 %2007 }
0x1508   :  { %v2010_v57 = vadd.f32 %v2008_v56, %v2000_v52 }
0x150a   :  { %3268 = vtanh.f32 %v2010_v57 }
0x1514   :  { %v3269_v6 = vpop.eup %3268 }
0x1515   :  { %2013 = vrot.lane.b32.xlu0 %v3269_v6, %s3283_s10 }
0x151d   :  { %v2178_v55 = vpop.permute.xlu1 %2177 }
0x151e   :  { %v3761_v59 = vadd.f32 %v2178_v55, %v2170_v58 }
0x1520   :  { %3270 = vtanh.f32 %v3761_v59 }
0x152a   :  { %v3271_v13 = vpop.eup %3270 }
0x152b   :  { %2183 = vrot.lane.b32.xlu1 %v3271_v13, %s3283_s10 }
0x1587   :  { %v2014_v0 = vpop.permute.xlu0 %2013 }
0x1588   :  { %v2016_v1 = vmul.f32 %v3263_v42, %v2014_v0 }
0x158a   :  { %2263 = vrot.lane.b32.xlu1 %v2016_v1, %s3284_s0 }
0x159d   :  { %v2184_v2 = vpop.permute.xlu1 %2183 }
0x159e   :  { %v2186_v3 = vmul.f32 %v3267_v48, %v2184_v2 }
0x15a0   :  { %2188 = vrot.lane.b32.xlu0 %v2186_v3, %s3284_s0 }
0x15fc   :  { %v2264_v4 = vpop.permute.xlu1 %2263 }
0x15fd   :  { %2971 = vmatmul.mubr.msk.f32.vlgmr.msra.gmra.mrb[28].mxu1 %vm197_vm3, %v2264_v4 }
0x1612   :  { %v2189_v11 = vpop.permute.xlu0 %2188 }
0x1613   :  { %2960 = vmatmul.mubr.msk.f32.vlgmr.msra.gmra.mrb[24].mxu0 %vm197_vm3, %v2189_v11 }
0x1614   :  { %3140 = vmatpush3.bf16.msra.mxu0 %v3137_v63  ;;  %2981 = vmatprep.mubr.msk.f32.mxu0 %vm197_vm3, %v3522_v40  ;;  %v14_v40 = vstv %s3844_s8 }
0x1615   :  { %3142 = vmatprep.subr.bf16.mxu0 %v3141_v9  ;;  %15 = vst [vmem:[#allocation2] sm:$0x1] %v14_v40 }
0x1618   :  { %3144 = vmatpush3.bf16.msra.mxu0 %v3141_v9 }
0x161b   :  { %2982 = vmatmul.mubr.msk.f32.vlgmr.msra.gmra.mrb[26].mxu0 %vm197_vm3, %v3569_v28 }
0x161c   :  { %2984 = vmatprep.mubr.msk.f32.mxu0 %vm197_vm3, %v3612_v10  ;;  %v2545_v20 = vld [vmem:[#allocation2] ss:$0 sm:$0xff] }
0x161f   :  { %2985 = vmatmul.mubr.msk.f32.gmra.mrb[28].mxu0 %vm197_vm3, %v3657_v60 }
0x1620   :  { %2987 = vmatprep.mubr.msk.f32.mxu0 %vm197_vm3, %v3700_v46 }
0x1623   :  { %2988 = vmatmul.mubr.msk.f32.gmra.mrb[30].mxu0 %vm197_vm3, %v3742_v16 }
0x1624   :  { %2990 = vmatprep.mubr.msk.f32.mxu0 %vm197_vm3, %v2189_v11 }
0x16d0   :  { %v2333_v28 = vpop.f32.mrb[28].mxu1 }
0x16d1   :  { %v2972_v12 = vpop.f32.mrb[29].mxu1 }
0x16e6   :  { %v2258_v17 = vpop.f32.mrb[24].mxu0 }
0x16e7   :  { %v2334_v10 = vadd.f32 %v2333_v28, %v2258_v17  ;;  %v2961_v15 = vpop.f32.mrb[25].mxu0 }
0x16e9   :  { %v2337_v60 = vadd.f32 %v3496_v62, %v2334_v10 }
0x16eb   :  { %3272 = vtanh.f32 %v2337_v60  ;;  %v2544_v32 = vmul.f32 -1.442695, %v2337_v60 }
0x16ed   :  { %3274 = vpow2.f32 %v2544_v32 }
0x16ee   :  { %v2983_v46 = vpop.f32.mrb[26].mxu0 }
0x16ef   :  { %v2450_v22 = vadd.f32 %v2983_v46, %v2545_v20  ;;  %v2444_v23 = vpop.f32.mrb[27].mxu0 }
0x16f0   :  { %v2445_v24 = vadd.f32 %v2545_v20, %v2444_v23 }
0x16f1   :  { %2485 = vst.msk [vmem:[%s3845_s9 + $0x8] sm:$0xff] %vm2483_vm4, %v2450_v22 }
0x16f2   :  { %2484 = vst.msk [vmem:[%s3845_s9] sm:$0xff] %vm2483_vm4, %v2445_v24  ;;  %v2986_v25 = vpop.f32.mrb[28].mxu0 }
0x16f3   :  { %v2460_v26 = vadd.f32 %v2986_v25, %v2545_v20  ;;  %v2454_v62 = vpop.f32.mrb[29].mxu0 }
0x16f4   :  { %v2455_v27 = vadd.f32 %v2545_v20, %v2454_v62 }
0x16f5   :  { %v3273_v29 = vpop.eup %3272  ;;  %2487 = vst.msk [vmem:[%s3845_s9 + $0x18] sm:$0xff] %vm2483_vm4, %v2460_v26 }
0x16f6   :  { %2486 = vst.msk [vmem:[%s3845_s9 + $0x10] sm:$0xff] %vm2483_vm4, %v2455_v27  ;;  %v2989_v30 = vpop.f32.mrb[30].mxu0  ;;  %2347 = vrot.lane.b32.xlu0 %v3273_v29, %s3283_s10 }
0x16f7   :  { %v2470_v31 = vadd.f32 %v2989_v30, %v2545_v20  ;;  %v2464_v16 = vpop.f32.mrb[31].mxu0  ;;  %v3275_v33 = vpop.eup %3274 }
0x16f8   :  { %v2465_v49 = vadd.f32 %v2545_v20, %v2464_v16  ;;  %v2341_v53 = vadd.f32 1.0, %v3275_v33 }
0x16f9   :  { %2489 = vst.msk [vmem:[%s3845_s9 + $0x28] sm:$0xff] %vm2483_vm4, %v2470_v31 }
0x16fa   :  { %2488 = vst.msk [vmem:[%s3845_s9 + $0x20] sm:$0xff] %vm2483_vm4, %v2465_v49  ;;  %3276 = vrcp.f32 %v2341_v53 }
0x1704   :  { %v3277_v34 = vpop.eup %3276 }
0x1705   :  { %v2345_v39 = vmul.f32 %v3277_v34, %v3761_v59 }
0x1768   :  { %v2348_v36 = vpop.permute.xlu0 %2347 }
0x1769   :  { %v2350_v35 = vmul.f32 %v3277_v34, %v2348_v36 }
0x176b   :  { %2352 = vrot.lane.b32.xlu1 %v2350_v35, %s3283_s10 }
0x17dd   :  { %v2353_v37 = vpop.permute.xlu1 %2352 }
0x17de   :  { %v2355_v38 = vadd.f32 %v2353_v37, %v2345_v39 }
0x17e0   :  { %3278 = vtanh.f32 %v2355_v38 }
0x17ea   :  { %v3279_v14 = vpop.eup %3278 }
0x17eb   :  { %2358 = vrot.lane.b32.xlu0 %v3279_v14, %s3283_s10 }
0x185d   :  { %v2359_v8 = vpop.permute.xlu0 %2358 }
0x185e   :  { %v2361_v44 = vmul.f32 %v3277_v34, %v2359_v8 }
0x1860   :  { %2374 = vrot.lane.b32.xlu1 %v2361_v44, %s3284_s0 }
0x18d2   :  { %v2375_v18 = vpop.permute.xlu1 %2374 }
0x18d3   :  { %2991 = vmatmul.mubr.msk.f32.gmra.mrb[32].mxu0 %vm197_vm3, %v2375_v18 }
0x19a6   :  { %v2992_v19 = vpop.f32.mrb[32].mxu0 }
0x19a7   :  { %v2480_v41 = vadd.f32 %v2992_v19, %v2545_v20  ;;  %v2474_v42 = vpop.f32.mrb[33].mxu0 }
0x19a8   :  { %v2475_v43 = vadd.f32 %v2545_v20, %v2474_v42 }
0x19a9   :  { %2491 = vst.msk [vmem:[%s3845_s9 + $0x38] sm:$0xff] %vm2483_vm4, %v2480_v41 }
0x19aa   :  { %2490 = vst.msk [vmem:[%s3845_s9 + $0x30] sm:$0xff] %vm2483_vm4, %v2475_v43 }

</bundles_post_ra>
